<compile_context>
chip_gen: v7x
topology: tpu7x:2x2x1
jax: 0.10.0
libtpu: 0.0.40
codegen_flags: <defaults>
</compile_context>

<pallas_src>
import functools

import jax
import jax.numpy as jnp
from jax import lax
from jax.experimental import pallas as pl
from jax.experimental.pallas import tpu as pltpu

EPS = 1e-5

CFG = dict(
    vocab_size=256,
    context_length=16,
    emb_dim=64,
    hidden_dim=128,
    n_heads=4,
    n_layers=2,
    weight_dtype=jnp.bfloat16,   # matmul weights (bf16 MXU path); norms stay f32
)


# ---------------------------------------------------------------------------
# RoPE tables (plain-JAX glue; mirrors precompute_rope_params exactly)
# ---------------------------------------------------------------------------
def precompute_rope_params(head_dim, theta_base=10000.0, context_length=4096):
    assert head_dim % 2 == 0
    inv_freq = 1.0 / theta_base ** (
        jnp.arange(0, head_dim, 2)[: head_dim // 2].astype(jnp.float32) / head_dim
    )
    positions = jnp.arange(context_length, dtype=jnp.float32)
    angles = positions[:, None] * inv_freq[None, :]
    angles = jnp.concatenate([angles, angles], axis=1)
    return jnp.cos(angles), jnp.sin(angles)


# ---------------------------------------------------------------------------
# Fully fused forward kernel (no grid; whole batch in one invocation):
#   token-embed -> [RMSNorm -> MHA(RoPE, causal) -> res -> RMSNorm -> SwiGLU
#   -> res] x L -> final RMSNorm -> logits
# ---------------------------------------------------------------------------
def llama2_fwd_kernel(
    idx_ref,      # (B*S, 1)   int32 token ids (flattened batch*seq)
    cos_ref,      # (B*S, E)   f32  head-periodic cos slab
    sinf_ref,     # (B*S, E)   f32  (-sin) on first-half lanes of each head, 0 else
    sins_ref,     # (B*S, E)   f32  (+sin) on second-half lanes of each head, 0 else
    mask_ref,     # (B*S, B*S) f32  block-diagonal causal additive bias
    emb_ref,      # (V, E)     bf16 token embedding table
    wqkv_ref,     # (L, E, 3E) bf16 fused Q|K|V projection
    wo_ref,       # (L, E, E)  bf16
    w12_ref,      # (L, E, 2*Hd) bf16 fused fc1|fc2
    w3_ref,       # (L, Hd, E) bf16
    norms_ref,    # (2L+1, E)  f32  rows: [n1_0, n2_0, n1_1, n2_1, ..., final]
    wout_ref,     # (E, V)     bf16 output head
    o_ref,        # (B*S, V)   f32 logits
    *, num_heads, n_layers,
):
    BS = idx_ref.shape[0]
    E = cos_ref.shape[1]
    V = emb_ref.shape[0]
    hd = E // num_heads
    scale = 1.0 / jnp.sqrt(jnp.float32(hd))

    # ---- in-kernel token embedding: one-hot @ table on the MXU (exact) ----
    idx = idx_ref[...]                                              # (BS, 1) i32
    vocab_iota = lax.broadcasted_iota(jnp.int32, (BS, V), 1)
    onehot = (vocab_iota == idx).astype(jnp.bfloat16)               # (BS, V)
    x = jnp.dot(onehot, emb_ref[...],
                preferred_element_type=jnp.float32)                 # (BS, E) f32

    cos = cos_ref[...]
    sinf = sinf_ref[...]
    sins = sins_ref[...]
    mask_bias = mask_ref[...]

    def rope(t):  # t: (BS, E) f32, full-slab head-periodic rotate-half
        # first-half lanes need t[i + hd/2] * (-sin); second-half t[i - hd/2] * sin.
        # Cross-head / wrap-around garbage is multiplied by zeros in sinf/sins.
        return (t * cos
                + pltpu.roll(t, E - hd // 2, 1) * sinf
                + pltpu.roll(t, hd // 2, 1) * sins)

    def rmsnorm(v, w_row):  # v: (BS, E) f32, w_row: (1, E) f32
        ms = jnp.mean(v * v, axis=-1, keepdims=True)
        return (v * lax.rsqrt(ms + EPS)) * w_row

    for l in range(n_layers):
        # ---- attention block ----
        xn = rmsnorm(x, norms_ref[2 * l: 2 * l + 1, :])
        qkv = jnp.dot(xn.astype(jnp.bfloat16), wqkv_ref[l],
                      preferred_element_type=jnp.float32)            # (BS, 3E)

        q = rope(qkv[:, :E] * scale)          # fold 1/sqrt(hd) into q (rope linear)
        k = rope(qkv[:, E:2 * E])
        v = qkv[:, 2 * E:3 * E]

        attn = None
        for h in range(num_heads):
            sl = slice(h * hd, (h + 1) * hd)
            qh = q[:, sl].astype(jnp.bfloat16)
            kh = k[:, sl].astype(jnp.bfloat16)
            # q @ k^T without an explicit transpose; bf16 in, f32 acc.
            s = lax.dot_general(qh, kh, (((1,), (1,)), ((), ())),
                                preferred_element_type=jnp.float32)  # (BS, BS)
            s = s + mask_bias
            s = s - jnp.max(s, axis=-1, keepdims=True)
            p = jnp.exp(s)
            p = p * pl.reciprocal(jnp.sum(p, axis=-1, keepdims=True), approx=True)
            ctx_h = jnp.dot(p.astype(jnp.bfloat16), v[:, sl].astype(jnp.bfloat16),
                            preferred_element_type=jnp.float32)      # (BS, hd)
            # fold Wo into the head loop: accumulate in a value (no scratch).
            contrib = jnp.dot(ctx_h.astype(jnp.bfloat16), wo_ref[l, sl, :],
                              preferred_element_type=jnp.float32)    # (BS, E)
            attn = contrib if attn is None else attn + contrib

        x = x + attn                                                 # residual 1

        # ---- SwiGLU FFN block ----
        xn2 = rmsnorm(x, norms_ref[2 * l + 1: 2 * l + 2, :])
        ab = jnp.dot(xn2.astype(jnp.bfloat16), w12_ref[l],
                     preferred_element_type=jnp.float32)             # (BS, 2*Hd)
        hidden_dim = ab.shape[1] // 2
        a = ab[:, :hidden_dim]
        b = ab[:, hidden_dim:]
        hidden = (a * jax.nn.sigmoid(a)) * b                         # SiLU(fc1)*fc2
        ff = jnp.dot(hidden.astype(jnp.bfloat16), w3_ref[l],
                     preferred_element_type=jnp.float32)
        x = x + ff                                                   # residual 2

    # ---- final RMSNorm + output head (V=256 lane-dense) ----
    xf = rmsnorm(x, norms_ref[2 * n_layers: 2 * n_layers + 1, :])
    o_ref[...] = jnp.dot(xf.astype(jnp.bfloat16), wout_ref[...],
                         preferred_element_type=jnp.float32).astype(o_ref.dtype)


# ---------------------------------------------------------------------------
# Wrapper / parameter init / forward
# ---------------------------------------------------------------------------
def init_params(key, cfg):
    E, Hd, V, L = cfg["emb_dim"], cfg["hidden_dim"], cfg["vocab_size"], cfg["n_layers"]
    wdt = cfg["weight_dtype"]
    keys = jax.random.split(key, 6)

    def rnd(k, shape):
        # stored as (in, out); kernel computes x @ W (== torch x @ W_linear.T)
        return (0.02 * jax.random.normal(k, shape)).astype(wdt)

    return dict(
        tok_emb=rnd(keys[0], (V, E)),
        wqkv=rnd(keys[1], (L, E, 3 * E)),      # fused Wq|Wk|Wv
        wo=rnd(keys[2], (L, E, E)),
        w12=rnd(keys[3], (L, E, 2 * Hd)),      # fused fc1|fc2
        w3=rnd(keys[4], (L, Hd, E)),
        out_head=rnd(keys[5], (E, V)),
        norms=jnp.ones((2 * L + 1, E), jnp.float32),   # n1_l, n2_l ..., final
    )


def build_llama2_forward(cfg, batch_size, seq_len):
    """Builds a jitted forward(in_idx, params) with all constants hoisted."""
    E, H, L = cfg["emb_dim"], cfg["n_heads"], cfg["n_layers"]
    V = cfg["vocab_size"]
    hd = E // H
    B, S = batch_size, seq_len
    BS = B * S

    # --- RoPE tables, tiled to full (B*S, E) head-periodic slabs ---
    cos_full, sin_full = precompute_rope_params(hd, context_length=cfg["context_length"])
    cos, sin = cos_full[:S], sin_full[:S]                           # (S, hd)
    first_half = jnp.arange(hd) < (hd // 2)
    sinf = jnp.where(first_half[None, :], -sin, 0.0)                # (S, hd)
    sins = jnp.where(first_half[None, :], 0.0, sin)                 # (S, hd)

    def to_slab(t):  # (S, hd) -> (B*S, E): tile over heads then batch
        return jnp.tile(jnp.tile(t, (1, H)), (B, 1)).astype(jnp.float32)

    cos_slab, sinf_slab, sins_slab = to_slab(cos), to_slab(sinf), to_slab(sins)

    # --- block-diagonal causal additive bias over the flattened B*S rows ---
    r = jnp.arange(BS)
    same_batch = (r[:, None] // S) == (r[None, :] // S)
    causal = r[None, :] <= r[:, None]
    mask_bias = jnp.where(same_batch & causal, 0.0, -1e30).astype(jnp.float32)

    kernel = functools.partial(llama2_fwd_kernel, num_heads=H, n_layers=L)

    def forward(in_idx, params):
        idx = in_idx.reshape(BS, 1).astype(jnp.int32)
        logits = pl.pallas_call(
            kernel,
            out_shape=jax.ShapeDtypeStruct((BS, V), jnp.float32),
        )(idx, cos_slab, sinf_slab, sins_slab, mask_bias,
          params["tok_emb"], params["wqkv"], params["wo"],
          params["w12"], params["w3"], params["norms"], params["out_head"])
        return logits.reshape(B, S, V)

    return jax.jit(forward)


if __name__ == "__main__":
    cfg = CFG
    key = jax.random.PRNGKey(0)
    k_idx, k_params = jax.random.split(key)

    B, S = 2, 8
    in_idx = jax.random.randint(k_idx, (B, S), 0, cfg["vocab_size"], dtype=jnp.int32)
    params = init_params(k_params, cfg)

    fwd = build_llama2_forward(cfg, B, S)
    logits = fwd(in_idx, params)                                    # (B, S, vocab)
    jax.block_until_ready(logits)
    assert logits.shape == (B, S, cfg["vocab_size"])
    assert bool(jnp.all(jnp.isfinite(logits)))
    print("KERNEL_OK")
</pallas_src>

<mosaic_0001>
module attributes {stable_mosaic.version = 11 : i64} {
  func.func @llama2_fwd_kernel(%arg0: memref<16x1xi32, #tpu.memory_space<vmem>>, %arg1: memref<16x64xf32, #tpu.memory_space<vmem>>, %arg2: memref<16x64xf32, #tpu.memory_space<vmem>>, %arg3: memref<16x64xf32, #tpu.memory_space<vmem>>, %arg4: memref<16x16xf32, #tpu.memory_space<vmem>>, %arg5: memref<256x64xbf16, #tpu.memory_space<vmem>>, %arg6: memref<2x64x192xbf16, #tpu.memory_space<vmem>>, %arg7: memref<2x64x64xbf16, #tpu.memory_space<vmem>>, %arg8: memref<2x64x256xbf16, #tpu.memory_space<vmem>>, %arg9: memref<2x128x64xbf16, #tpu.memory_space<vmem>>, %arg10: memref<5x64xf32, #tpu.memory_space<vmem>>, %arg11: memref<64x256xbf16, #tpu.memory_space<vmem>>, %arg12: memref<16x256xf32, #tpu.memory_space<vmem>>) attributes {dimension_semantics = [], scalar_prefetch = 0 : i64, scratch_operands = 0 : i64, tpu.core_type = #tpu.core_type<tc>} {
    %cst = arith.constant 1.600000e+01 : f32
    %0 = math.sqrt %cst : f32
    %cst_0 = arith.constant 1.000000e+00 : f32
    %1 = arith.divf %cst_0, %0 : f32
    %c0 = arith.constant 0 : index
    %c0_1 = arith.constant 0 : index
    %2 = vector.load %arg0[%c0, %c0_1] : memref<16x1xi32, #tpu.memory_space<vmem>>, vector<16x1xi32>
    %3 = tpu.iota {dimensions = array<i32: 1>} : vector<16x256xi32>
    %4 = vector.broadcast %2 : vector<16x1xi32> to vector<16x256xi32>
    %5 = arith.cmpi eq, %3, %4 : vector<16x256xi32>
    %6 = arith.extui %5 : vector<16x256xi1> to vector<16x256xi32>
    %7 = arith.sitofp %6 : vector<16x256xi32> to vector<16x256xf32>
    %8 = arith.truncf %7 : vector<16x256xf32> to vector<16x256xbf16>
    %c0_2 = arith.constant 0 : index
    %c0_3 = arith.constant 0 : index
    %9 = vector.load %arg5[%c0_2, %c0_3] : memref<256x64xbf16, #tpu.memory_space<vmem>>, vector<256x64xbf16>
    %cst_4 = arith.constant dense<0.000000e+00> : vector<16x64xf32>
    %10 = tpu.matmul %8, %9, %cst_4 {dimension_numbers = #tpu.dot_dimension_numbers<[1], [0], [0], [1], [0, 0, 1, 1], [], []>} : vector<16x256xbf16>, vector<256x64xbf16>, vector<16x64xf32> -> vector<16x64xf32>
    %c0_5 = arith.constant 0 : index
    %c0_6 = arith.constant 0 : index
    %11 = vector.load %arg1[%c0_5, %c0_6] : memref<16x64xf32, #tpu.memory_space<vmem>>, vector<16x64xf32>
    %c0_7 = arith.constant 0 : index
    %c0_8 = arith.constant 0 : index
    %12 = vector.load %arg2[%c0_7, %c0_8] : memref<16x64xf32, #tpu.memory_space<vmem>>, vector<16x64xf32>
    %c0_9 = arith.constant 0 : index
    %c0_10 = arith.constant 0 : index
    %13 = vector.load %arg3[%c0_9, %c0_10] : memref<16x64xf32, #tpu.memory_space<vmem>>, vector<16x64xf32>
    %c0_11 = arith.constant 0 : index
    %c0_12 = arith.constant 0 : index
    %14 = vector.load %arg4[%c0_11, %c0_12] : memref<16x16xf32, #tpu.memory_space<vmem>>, vector<16x16xf32>
    %c0_13 = arith.constant 0 : index
    %c0_14 = arith.constant 0 : index
    %15 = vector.load %arg10[%c0_13, %c0_14] : memref<5x64xf32, #tpu.memory_space<vmem>>, vector<1x64xf32>
    %16 = arith.mulf %10, %10 : vector<16x64xf32>
    %cst_15 = arith.constant dense<0.000000e+00> : vector<16xf32>
    %17 = vector.multi_reduction <add>, %16, %cst_15 [1] : vector<16x64xf32> to vector<16xf32>
    %18 = vector.shape_cast %17 : vector<16xf32> to vector<16x1xf32>
    %cst_16 = arith.constant 6.400000e+01 : f32
    %19 = vector.broadcast %cst_16 : f32 to vector<16x1xf32>
    %20 = arith.divf %18, %19 : vector<16x1xf32>
    %cst_17 = arith.constant 9.99999974E-6 : f32
    %21 = vector.broadcast %cst_17 : f32 to vector<16x1xf32>
    %22 = arith.addf %20, %21 : vector<16x1xf32>
    %23 = math.rsqrt %22 : vector<16x1xf32>
    %24 = vector.broadcast %23 : vector<16x1xf32> to vector<16x64xf32>
    %25 = arith.mulf %10, %24 : vector<16x64xf32>
    %26 = vector.broadcast %15 : vector<1x64xf32> to vector<16x64xf32>
    %27 = arith.mulf %25, %26 : vector<16x64xf32>
    %28 = arith.truncf %27 : vector<16x64xf32> to vector<16x64xbf16>
    %c0_18 = arith.constant 0 : index
    %c0_19 = arith.constant 0 : index
    %c0_20 = arith.constant 0 : index
    %29 = vector.load %arg6[%c0_18, %c0_19, %c0_20] : memref<2x64x192xbf16, #tpu.memory_space<vmem>>, vector<1x64x192xbf16>
    %30 = vector.shape_cast %29 : vector<1x64x192xbf16> to vector<64x192xbf16>
    %cst_21 = arith.constant dense<0.000000e+00> : vector<16x192xf32>
    %31 = tpu.matmul %28, %30, %cst_21 {dimension_numbers = #tpu.dot_dimension_numbers<[1], [0], [0], [1], [0, 0, 1, 1], [], []>} : vector<16x64xbf16>, vector<64x192xbf16>, vector<16x192xf32> -> vector<16x192xf32>
    %32 = vector.extract_strided_slice %31 {offsets = [0, 0], sizes = [16, 64], strides = [1, 1]} : vector<16x192xf32> to vector<16x64xf32>
    %33 = vector.broadcast %1 : f32 to vector<16x64xf32>
    %34 = arith.mulf %32, %33 : vector<16x64xf32>
    %35 = arith.mulf %34, %11 : vector<16x64xf32>
    %c56_i32 = arith.constant 56 : i32
    %36 = tpu.dynamic_rotate %34 by %c56_i32 dim 1 : vector<16x64xf32>, i32 -> vector<16x64xf32>
    %37 = arith.mulf %36, %12 : vector<16x64xf32>
    %38 = arith.addf %35, %37 : vector<16x64xf32>
    %c8_i32 = arith.constant 8 : i32
    %39 = tpu.dynamic_rotate %34 by %c8_i32 dim 1 : vector<16x64xf32>, i32 -> vector<16x64xf32>
    %40 = arith.mulf %39, %13 : vector<16x64xf32>
    %41 = arith.addf %38, %40 : vector<16x64xf32>
    %42 = vector.extract_strided_slice %31 {offsets = [0, 64], sizes = [16, 64], strides = [1, 1]} : vector<16x192xf32> to vector<16x64xf32>
    %43 = arith.mulf %42, %11 : vector<16x64xf32>
    %c56_i32_22 = arith.constant 56 : i32
    %44 = tpu.dynamic_rotate %42 by %c56_i32_22 dim 1 : vector<16x64xf32>, i32 -> vector<16x64xf32>
    %45 = arith.mulf %44, %12 : vector<16x64xf32>
    %46 = arith.addf %43, %45 : vector<16x64xf32>
    %c8_i32_23 = arith.constant 8 : i32
    %47 = tpu.dynamic_rotate %42 by %c8_i32_23 dim 1 : vector<16x64xf32>, i32 -> vector<16x64xf32>
    %48 = arith.mulf %47, %13 : vector<16x64xf32>
    %49 = arith.addf %46, %48 : vector<16x64xf32>
    %50 = vector.extract_strided_slice %31 {offsets = [0, 128], sizes = [16, 64], strides = [1, 1]} : vector<16x192xf32> to vector<16x64xf32>
    %51 = vector.extract_strided_slice %41 {offsets = [0, 0], sizes = [16, 16], strides = [1, 1]} : vector<16x64xf32> to vector<16x16xf32>
    %52 = arith.truncf %51 : vector<16x16xf32> to vector<16x16xbf16>
    %53 = vector.extract_strided_slice %49 {offsets = [0, 0], sizes = [16, 16], strides = [1, 1]} : vector<16x64xf32> to vector<16x16xf32>
    %54 = arith.truncf %53 : vector<16x16xf32> to vector<16x16xbf16>
    %cst_24 = arith.constant dense<0.000000e+00> : vector<16x16xf32>
    %55 = tpu.matmul %52, %54, %cst_24 {dimension_numbers = #tpu.dot_dimension_numbers<[1], [1], [0], [0], [0, 0, 1, 0], [], []>} : vector<16x16xbf16>, vector<16x16xbf16>, vector<16x16xf32> -> vector<16x16xf32>
    %56 = arith.addf %55, %14 : vector<16x16xf32>
    %cst_25 = arith.constant dense<0xFF800000> : vector<16xf32>
    %57 = vector.multi_reduction <maximumf>, %56, %cst_25 [1] : vector<16x16xf32> to vector<16xf32>
    %58 = vector.shape_cast %57 : vector<16xf32> to vector<16x1xf32>
    %59 = vector.broadcast %58 : vector<16x1xf32> to vector<16x16xf32>
    %60 = arith.subf %56, %59 : vector<16x16xf32>
    %61 = math.exp %60 : vector<16x16xf32>
    %cst_26 = arith.constant dense<0.000000e+00> : vector<16xf32>
    %62 = vector.multi_reduction <add>, %61, %cst_26 [1] : vector<16x16xf32> to vector<16xf32>
    %63 = vector.shape_cast %62 : vector<16xf32> to vector<16x1xf32>
    %64 = tpu.reciprocal %63 {approx = true} : vector<16x1xf32> -> vector<16x1xf32>
    %65 = vector.broadcast %64 : vector<16x1xf32> to vector<16x16xf32>
    %66 = arith.mulf %61, %65 : vector<16x16xf32>
    %67 = arith.truncf %66 : vector<16x16xf32> to vector<16x16xbf16>
    %68 = vector.extract_strided_slice %50 {offsets = [0, 0], sizes = [16, 16], strides = [1, 1]} : vector<16x64xf32> to vector<16x16xf32>
    %69 = arith.truncf %68 : vector<16x16xf32> to vector<16x16xbf16>
    %cst_27 = arith.constant dense<0.000000e+00> : vector<16x16xf32>
    %70 = tpu.matmul %67, %69, %cst_27 {dimension_numbers = #tpu.dot_dimension_numbers<[1], [0], [0], [1], [0, 0, 1, 1], [], []>} : vector<16x16xbf16>, vector<16x16xbf16>, vector<16x16xf32> -> vector<16x16xf32>
    %71 = arith.truncf %70 : vector<16x16xf32> to vector<16x16xbf16>
    %c0_28 = arith.constant 0 : index
    %c0_29 = arith.constant 0 : index
    %c0_30 = arith.constant 0 : index
    %72 = vector.load %arg7[%c0_28, %c0_29, %c0_30] : memref<2x64x64xbf16, #tpu.memory_space<vmem>>, vector<1x16x64xbf16>
    %73 = vector.shape_cast %72 : vector<1x16x64xbf16> to vector<16x64xbf16>
    %cst_31 = arith.constant dense<0.000000e+00> : vector<16x64xf32>
    %74 = tpu.matmul %71, %73, %cst_31 {dimension_numbers = #tpu.dot_dimension_numbers<[1], [0], [0], [1], [0, 0, 1, 1], [], []>} : vector<16x16xbf16>, vector<16x64xbf16>, vector<16x64xf32> -> vector<16x64xf32>
    %75 = vector.extract_strided_slice %41 {offsets = [0, 16], sizes = [16, 16], strides = [1, 1]} : vector<16x64xf32> to vector<16x16xf32>
    %76 = arith.truncf %75 : vector<16x16xf32> to vector<16x16xbf16>
    %77 = vector.extract_strided_slice %49 {offsets = [0, 16], sizes = [16, 16], strides = [1, 1]} : vector<16x64xf32> to vector<16x16xf32>
    %78 = arith.truncf %77 : vector<16x16xf32> to vector<16x16xbf16>
    %cst_32 = arith.constant dense<0.000000e+00> : vector<16x16xf32>
    %79 = tpu.matmul %76, %78, %cst_32 {dimension_numbers = #tpu.dot_dimension_numbers<[1], [1], [0], [0], [0, 0, 1, 0], [], []>} : vector<16x16xbf16>, vector<16x16xbf16>, vector<16x16xf32> -> vector<16x16xf32>
    %80 = arith.addf %79, %14 : vector<16x16xf32>
    %cst_33 = arith.constant dense<0xFF800000> : vector<16xf32>
    %81 = vector.multi_reduction <maximumf>, %80, %cst_33 [1] : vector<16x16xf32> to vector<16xf32>
    %82 = vector.shape_cast %81 : vector<16xf32> to vector<16x1xf32>
    %83 = vector.broadcast %82 : vector<16x1xf32> to vector<16x16xf32>
    %84 = arith.subf %80, %83 : vector<16x16xf32>
    %85 = math.exp %84 : vector<16x16xf32>
    %cst_34 = arith.constant dense<0.000000e+00> : vector<16xf32>
    %86 = vector.multi_reduction <add>, %85, %cst_34 [1] : vector<16x16xf32> to vector<16xf32>
    %87 = vector.shape_cast %86 : vector<16xf32> to vector<16x1xf32>
    %88 = tpu.reciprocal %87 {approx = true} : vector<16x1xf32> -> vector<16x1xf32>
    %89 = vector.broadcast %88 : vector<16x1xf32> to vector<16x16xf32>
    %90 = arith.mulf %85, %89 : vector<16x16xf32>
    %91 = arith.truncf %90 : vector<16x16xf32> to vector<16x16xbf16>
    %92 = vector.extract_strided_slice %50 {offsets = [0, 16], sizes = [16, 16], strides = [1, 1]} : vector<16x64xf32> to vector<16x16xf32>
    %93 = arith.truncf %92 : vector<16x16xf32> to vector<16x16xbf16>
    %cst_35 = arith.constant dense<0.000000e+00> : vector<16x16xf32>
    %94 = tpu.matmul %91, %93, %cst_35 {dimension_numbers = #tpu.dot_dimension_numbers<[1], [0], [0], [1], [0, 0, 1, 1], [], []>} : vector<16x16xbf16>, vector<16x16xbf16>, vector<16x16xf32> -> vector<16x16xf32>
    %95 = arith.truncf %94 : vector<16x16xf32> to vector<16x16xbf16>
    %c0_36 = arith.constant 0 : index
    %c16 = arith.constant 16 : index
    %c0_37 = arith.constant 0 : index
    %96 = vector.load %arg7[%c0_36, %c16, %c0_37] : memref<2x64x64xbf16, #tpu.memory_space<vmem>>, vector<1x16x64xbf16>
    %97 = vector.shape_cast %96 : vector<1x16x64xbf16> to vector<16x64xbf16>
    %cst_38 = arith.constant dense<0.000000e+00> : vector<16x64xf32>
    %98 = tpu.matmul %95, %97, %cst_38 {dimension_numbers = #tpu.dot_dimension_numbers<[1], [0], [0], [1], [0, 0, 1, 1], [], []>} : vector<16x16xbf16>, vector<16x64xbf16>, vector<16x64xf32> -> vector<16x64xf32>
    %99 = arith.addf %74, %98 : vector<16x64xf32>
    %100 = vector.extract_strided_slice %41 {offsets = [0, 32], sizes = [16, 16], strides = [1, 1]} : vector<16x64xf32> to vector<16x16xf32>
    %101 = arith.truncf %100 : vector<16x16xf32> to vector<16x16xbf16>
    %102 = vector.extract_strided_slice %49 {offsets = [0, 32], sizes = [16, 16], strides = [1, 1]} : vector<16x64xf32> to vector<16x16xf32>
    %103 = arith.truncf %102 : vector<16x16xf32> to vector<16x16xbf16>
    %cst_39 = arith.constant dense<0.000000e+00> : vector<16x16xf32>
    %104 = tpu.matmul %101, %103, %cst_39 {dimension_numbers = #tpu.dot_dimension_numbers<[1], [1], [0], [0], [0, 0, 1, 0], [], []>} : vector<16x16xbf16>, vector<16x16xbf16>, vector<16x16xf32> -> vector<16x16xf32>
    %105 = arith.addf %104, %14 : vector<16x16xf32>
    %cst_40 = arith.constant dense<0xFF800000> : vector<16xf32>
    %106 = vector.multi_reduction <maximumf>, %105, %cst_40 [1] : vector<16x16xf32> to vector<16xf32>
    %107 = vector.shape_cast %106 : vector<16xf32> to vector<16x1xf32>
    %108 = vector.broadcast %107 : vector<16x1xf32> to vector<16x16xf32>
    %109 = arith.subf %105, %108 : vector<16x16xf32>
    %110 = math.exp %109 : vector<16x16xf32>
    %cst_41 = arith.constant dense<0.000000e+00> : vector<16xf32>
    %111 = vector.multi_reduction <add>, %110, %cst_41 [1] : vector<16x16xf32> to vector<16xf32>
    %112 = vector.shape_cast %111 : vector<16xf32> to vector<16x1xf32>
    %113 = tpu.reciprocal %112 {approx = true} : vector<16x1xf32> -> vector<16x1xf32>
    %114 = vector.broadcast %113 : vector<16x1xf32> to vector<16x16xf32>
    %115 = arith.mulf %110, %114 : vector<16x16xf32>
    %116 = arith.truncf %115 : vector<16x16xf32> to vector<16x16xbf16>
    %117 = vector.extract_strided_slice %50 {offsets = [0, 32], sizes = [16, 16], strides = [1, 1]} : vector<16x64xf32> to vector<16x16xf32>
    %118 = arith.truncf %117 : vector<16x16xf32> to vector<16x16xbf16>
    %cst_42 = arith.constant dense<0.000000e+00> : vector<16x16xf32>
    %119 = tpu.matmul %116, %118, %cst_42 {dimension_numbers = #tpu.dot_dimension_numbers<[1], [0], [0], [1], [0, 0, 1, 1], [], []>} : vector<16x16xbf16>, vector<16x16xbf16>, vector<16x16xf32> -> vector<16x16xf32>
    %120 = arith.truncf %119 : vector<16x16xf32> to vector<16x16xbf16>
    %c0_43 = arith.constant 0 : index
    %c32 = arith.constant 32 : index
    %c0_44 = arith.constant 0 : index
    %121 = vector.load %arg7[%c0_43, %c32, %c0_44] : memref<2x64x64xbf16, #tpu.memory_space<vmem>>, vector<1x16x64xbf16>
    %122 = vector.shape_cast %121 : vector<1x16x64xbf16> to vector<16x64xbf16>
    %cst_45 = arith.constant dense<0.000000e+00> : vector<16x64xf32>
    %123 = tpu.matmul %120, %122, %cst_45 {dimension_numbers = #tpu.dot_dimension_numbers<[1], [0], [0], [1], [0, 0, 1, 1], [], []>} : vector<16x16xbf16>, vector<16x64xbf16>, vector<16x64xf32> -> vector<16x64xf32>
    %124 = arith.addf %99, %123 : vector<16x64xf32>
    %125 = vector.extract_strided_slice %41 {offsets = [0, 48], sizes = [16, 16], strides = [1, 1]} : vector<16x64xf32> to vector<16x16xf32>
    %126 = arith.truncf %125 : vector<16x16xf32> to vector<16x16xbf16>
    %127 = vector.extract_strided_slice %49 {offsets = [0, 48], sizes = [16, 16], strides = [1, 1]} : vector<16x64xf32> to vector<16x16xf32>
    %128 = arith.truncf %127 : vector<16x16xf32> to vector<16x16xbf16>
    %cst_46 = arith.constant dense<0.000000e+00> : vector<16x16xf32>
    %129 = tpu.matmul %126, %128, %cst_46 {dimension_numbers = #tpu.dot_dimension_numbers<[1], [1], [0], [0], [0, 0, 1, 0], [], []>} : vector<16x16xbf16>, vector<16x16xbf16>, vector<16x16xf32> -> vector<16x16xf32>
    %130 = arith.addf %129, %14 : vector<16x16xf32>
    %cst_47 = arith.constant dense<0xFF800000> : vector<16xf32>
    %131 = vector.multi_reduction <maximumf>, %130, %cst_47 [1] : vector<16x16xf32> to vector<16xf32>
    %132 = vector.shape_cast %131 : vector<16xf32> to vector<16x1xf32>
    %133 = vector.broadcast %132 : vector<16x1xf32> to vector<16x16xf32>
    %134 = arith.subf %130, %133 : vector<16x16xf32>
    %135 = math.exp %134 : vector<16x16xf32>
    %cst_48 = arith.constant dense<0.000000e+00> : vector<16xf32>
    %136 = vector.multi_reduction <add>, %135, %cst_48 [1] : vector<16x16xf32> to vector<16xf32>
    %137 = vector.shape_cast %136 : vector<16xf32> to vector<16x1xf32>
    %138 = tpu.reciprocal %137 {approx = true} : vector<16x1xf32> -> vector<16x1xf32>
    %139 = vector.broadcast %138 : vector<16x1xf32> to vector<16x16xf32>
    %140 = arith.mulf %135, %139 : vector<16x16xf32>
    %141 = arith.truncf %140 : vector<16x16xf32> to vector<16x16xbf16>
    %142 = vector.extract_strided_slice %50 {offsets = [0, 48], sizes = [16, 16], strides = [1, 1]} : vector<16x64xf32> to vector<16x16xf32>
    %143 = arith.truncf %142 : vector<16x16xf32> to vector<16x16xbf16>
    %cst_49 = arith.constant dense<0.000000e+00> : vector<16x16xf32>
    %144 = tpu.matmul %141, %143, %cst_49 {dimension_numbers = #tpu.dot_dimension_numbers<[1], [0], [0], [1], [0, 0, 1, 1], [], []>} : vector<16x16xbf16>, vector<16x16xbf16>, vector<16x16xf32> -> vector<16x16xf32>
    %145 = arith.truncf %144 : vector<16x16xf32> to vector<16x16xbf16>
    %c0_50 = arith.constant 0 : index
    %c48 = arith.constant 48 : index
    %c0_51 = arith.constant 0 : index
    %146 = vector.load %arg7[%c0_50, %c48, %c0_51] : memref<2x64x64xbf16, #tpu.memory_space<vmem>>, vector<1x16x64xbf16>
    %147 = vector.shape_cast %146 : vector<1x16x64xbf16> to vector<16x64xbf16>
    %cst_52 = arith.constant dense<0.000000e+00> : vector<16x64xf32>
    %148 = tpu.matmul %145, %147, %cst_52 {dimension_numbers = #tpu.dot_dimension_numbers<[1], [0], [0], [1], [0, 0, 1, 1], [], []>} : vector<16x16xbf16>, vector<16x64xbf16>, vector<16x64xf32> -> vector<16x64xf32>
    %149 = arith.addf %124, %148 : vector<16x64xf32>
    %150 = arith.addf %10, %149 : vector<16x64xf32>
    %c1 = arith.constant 1 : index
    %c0_53 = arith.constant 0 : index
    %151 = vector.load %arg10[%c1, %c0_53] : memref<5x64xf32, #tpu.memory_space<vmem>>, vector<1x64xf32>
    %152 = arith.mulf %150, %150 : vector<16x64xf32>
    %cst_54 = arith.constant dense<0.000000e+00> : vector<16xf32>
    %153 = vector.multi_reduction <add>, %152, %cst_54 [1] : vector<16x64xf32> to vector<16xf32>
    %154 = vector.shape_cast %153 : vector<16xf32> to vector<16x1xf32>
    %cst_55 = arith.constant 6.400000e+01 : f32
    %155 = vector.broadcast %cst_55 : f32 to vector<16x1xf32>
    %156 = arith.divf %154, %155 : vector<16x1xf32>
    %cst_56 = arith.constant 9.99999974E-6 : f32
    %157 = vector.broadcast %cst_56 : f32 to vector<16x1xf32>
    %158 = arith.addf %156, %157 : vector<16x1xf32>
    %159 = math.rsqrt %158 : vector<16x1xf32>
    %160 = vector.broadcast %159 : vector<16x1xf32> to vector<16x64xf32>
    %161 = arith.mulf %150, %160 : vector<16x64xf32>
    %162 = vector.broadcast %151 : vector<1x64xf32> to vector<16x64xf32>
    %163 = arith.mulf %161, %162 : vector<16x64xf32>
    %164 = arith.truncf %163 : vector<16x64xf32> to vector<16x64xbf16>
    %c0_57 = arith.constant 0 : index
    %c0_58 = arith.constant 0 : index
    %c0_59 = arith.constant 0 : index
    %165 = vector.load %arg8[%c0_57, %c0_58, %c0_59] : memref<2x64x256xbf16, #tpu.memory_space<vmem>>, vector<1x64x256xbf16>
    %166 = vector.shape_cast %165 : vector<1x64x256xbf16> to vector<64x256xbf16>
    %cst_60 = arith.constant dense<0.000000e+00> : vector<16x256xf32>
    %167 = tpu.matmul %164, %166, %cst_60 {dimension_numbers = #tpu.dot_dimension_numbers<[1], [0], [0], [1], [0, 0, 1, 1], [], []>} : vector<16x64xbf16>, vector<64x256xbf16>, vector<16x256xf32> -> vector<16x256xf32>
    %168 = vector.extract_strided_slice %167 {offsets = [0, 0], sizes = [16, 128], strides = [1, 1]} : vector<16x256xf32> to vector<16x128xf32>
    %169 = vector.extract_strided_slice %167 {offsets = [0, 128], sizes = [16, 128], strides = [1, 1]} : vector<16x256xf32> to vector<16x128xf32>
    %170 = arith.negf %168 : vector<16x128xf32>
    %171 = math.exp %170 : vector<16x128xf32>
    %cst_61 = arith.constant 1.000000e+00 : f32
    %172 = vector.broadcast %cst_61 : f32 to vector<16x128xf32>
    %173 = arith.addf %172, %171 : vector<16x128xf32>
    %174 = arith.divf %172, %173 : vector<16x128xf32>
    %175 = arith.mulf %168, %174 : vector<16x128xf32>
    %176 = arith.mulf %175, %169 : vector<16x128xf32>
    %177 = arith.truncf %176 : vector<16x128xf32> to vector<16x128xbf16>
    %c0_62 = arith.constant 0 : index
    %c0_63 = arith.constant 0 : index
    %c0_64 = arith.constant 0 : index
    %178 = vector.load %arg9[%c0_62, %c0_63, %c0_64] : memref<2x128x64xbf16, #tpu.memory_space<vmem>>, vector<1x128x64xbf16>
    %179 = vector.shape_cast %178 : vector<1x128x64xbf16> to vector<128x64xbf16>
    %cst_65 = arith.constant dense<0.000000e+00> : vector<16x64xf32>
    %180 = tpu.matmul %177, %179, %cst_65 {dimension_numbers = #tpu.dot_dimension_numbers<[1], [0], [0], [1], [0, 0, 1, 1], [], []>} : vector<16x128xbf16>, vector<128x64xbf16>, vector<16x64xf32> -> vector<16x64xf32>
    %181 = arith.addf %150, %180 : vector<16x64xf32>
    %c2 = arith.constant 2 : index
    %c0_66 = arith.constant 0 : index
    %182 = vector.load %arg10[%c2, %c0_66] : memref<5x64xf32, #tpu.memory_space<vmem>>, vector<1x64xf32>
    %183 = arith.mulf %181, %181 : vector<16x64xf32>
    %cst_67 = arith.constant dense<0.000000e+00> : vector<16xf32>
    %184 = vector.multi_reduction <add>, %183, %cst_67 [1] : vector<16x64xf32> to vector<16xf32>
    %185 = vector.shape_cast %184 : vector<16xf32> to vector<16x1xf32>
    %cst_68 = arith.constant 6.400000e+01 : f32
    %186 = vector.broadcast %cst_68 : f32 to vector<16x1xf32>
    %187 = arith.divf %185, %186 : vector<16x1xf32>
    %cst_69 = arith.constant 9.99999974E-6 : f32
    %188 = vector.broadcast %cst_69 : f32 to vector<16x1xf32>
    %189 = arith.addf %187, %188 : vector<16x1xf32>
    %190 = math.rsqrt %189 : vector<16x1xf32>
    %191 = vector.broadcast %190 : vector<16x1xf32> to vector<16x64xf32>
    %192 = arith.mulf %181, %191 : vector<16x64xf32>
    %193 = vector.broadcast %182 : vector<1x64xf32> to vector<16x64xf32>
    %194 = arith.mulf %192, %193 : vector<16x64xf32>
    %195 = arith.truncf %194 : vector<16x64xf32> to vector<16x64xbf16>
    %c1_70 = arith.constant 1 : index
    %c0_71 = arith.constant 0 : index
    %c0_72 = arith.constant 0 : index
    %196 = vector.load %arg6[%c1_70, %c0_71, %c0_72] : memref<2x64x192xbf16, #tpu.memory_space<vmem>>, vector<1x64x192xbf16>
    %197 = vector.shape_cast %196 : vector<1x64x192xbf16> to vector<64x192xbf16>
    %cst_73 = arith.constant dense<0.000000e+00> : vector<16x192xf32>
    %198 = tpu.matmul %195, %197, %cst_73 {dimension_numbers = #tpu.dot_dimension_numbers<[1], [0], [0], [1], [0, 0, 1, 1], [], []>} : vector<16x64xbf16>, vector<64x192xbf16>, vector<16x192xf32> -> vector<16x192xf32>
    %199 = vector.extract_strided_slice %198 {offsets = [0, 0], sizes = [16, 64], strides = [1, 1]} : vector<16x192xf32> to vector<16x64xf32>
    %200 = vector.broadcast %1 : f32 to vector<16x64xf32>
    %201 = arith.mulf %199, %200 : vector<16x64xf32>
    %202 = arith.mulf %201, %11 : vector<16x64xf32>
    %c56_i32_74 = arith.constant 56 : i32
    %203 = tpu.dynamic_rotate %201 by %c56_i32_74 dim 1 : vector<16x64xf32>, i32 -> vector<16x64xf32>
    %204 = arith.mulf %203, %12 : vector<16x64xf32>
    %205 = arith.addf %202, %204 : vector<16x64xf32>
    %c8_i32_75 = arith.constant 8 : i32
    %206 = tpu.dynamic_rotate %201 by %c8_i32_75 dim 1 : vector<16x64xf32>, i32 -> vector<16x64xf32>
    %207 = arith.mulf %206, %13 : vector<16x64xf32>
    %208 = arith.addf %205, %207 : vector<16x64xf32>
    %209 = vector.extract_strided_slice %198 {offsets = [0, 64], sizes = [16, 64], strides = [1, 1]} : vector<16x192xf32> to vector<16x64xf32>
    %210 = arith.mulf %209, %11 : vector<16x64xf32>
    %c56_i32_76 = arith.constant 56 : i32
    %211 = tpu.dynamic_rotate %209 by %c56_i32_76 dim 1 : vector<16x64xf32>, i32 -> vector<16x64xf32>
    %212 = arith.mulf %211, %12 : vector<16x64xf32>
    %213 = arith.addf %210, %212 : vector<16x64xf32>
    %c8_i32_77 = arith.constant 8 : i32
    %214 = tpu.dynamic_rotate %209 by %c8_i32_77 dim 1 : vector<16x64xf32>, i32 -> vector<16x64xf32>
    %215 = arith.mulf %214, %13 : vector<16x64xf32>
    %216 = arith.addf %213, %215 : vector<16x64xf32>
    %217 = vector.extract_strided_slice %198 {offsets = [0, 128], sizes = [16, 64], strides = [1, 1]} : vector<16x192xf32> to vector<16x64xf32>
    %218 = vector.extract_strided_slice %208 {offsets = [0, 0], sizes = [16, 16], strides = [1, 1]} : vector<16x64xf32> to vector<16x16xf32>
    %219 = arith.truncf %218 : vector<16x16xf32> to vector<16x16xbf16>
    %220 = vector.extract_strided_slice %216 {offsets = [0, 0], sizes = [16, 16], strides = [1, 1]} : vector<16x64xf32> to vector<16x16xf32>
    %221 = arith.truncf %220 : vector<16x16xf32> to vector<16x16xbf16>
    %cst_78 = arith.constant dense<0.000000e+00> : vector<16x16xf32>
    %222 = tpu.matmul %219, %221, %cst_78 {dimension_numbers = #tpu.dot_dimension_numbers<[1], [1], [0], [0], [0, 0, 1, 0], [], []>} : vector<16x16xbf16>, vector<16x16xbf16>, vector<16x16xf32> -> vector<16x16xf32>
    %223 = arith.addf %222, %14 : vector<16x16xf32>
    %cst_79 = arith.constant dense<0xFF800000> : vector<16xf32>
    %224 = vector.multi_reduction <maximumf>, %223, %cst_79 [1] : vector<16x16xf32> to vector<16xf32>
    %225 = vector.shape_cast %224 : vector<16xf32> to vector<16x1xf32>
    %226 = vector.broadcast %225 : vector<16x1xf32> to vector<16x16xf32>
    %227 = arith.subf %223, %226 : vector<16x16xf32>
    %228 = math.exp %227 : vector<16x16xf32>
    %cst_80 = arith.constant dense<0.000000e+00> : vector<16xf32>
    %229 = vector.multi_reduction <add>, %228, %cst_80 [1] : vector<16x16xf32> to vector<16xf32>
    %230 = vector.shape_cast %229 : vector<16xf32> to vector<16x1xf32>
    %231 = tpu.reciprocal %230 {approx = true} : vector<16x1xf32> -> vector<16x1xf32>
    %232 = vector.broadcast %231 : vector<16x1xf32> to vector<16x16xf32>
    %233 = arith.mulf %228, %232 : vector<16x16xf32>
    %234 = arith.truncf %233 : vector<16x16xf32> to vector<16x16xbf16>
    %235 = vector.extract_strided_slice %217 {offsets = [0, 0], sizes = [16, 16], strides = [1, 1]} : vector<16x64xf32> to vector<16x16xf32>
    %236 = arith.truncf %235 : vector<16x16xf32> to vector<16x16xbf16>
    %cst_81 = arith.constant dense<0.000000e+00> : vector<16x16xf32>
    %237 = tpu.matmul %234, %236, %cst_81 {dimension_numbers = #tpu.dot_dimension_numbers<[1], [0], [0], [1], [0, 0, 1, 1], [], []>} : vector<16x16xbf16>, vector<16x16xbf16>, vector<16x16xf32> -> vector<16x16xf32>
    %238 = arith.truncf %237 : vector<16x16xf32> to vector<16x16xbf16>
    %c1_82 = arith.constant 1 : index
    %c0_83 = arith.constant 0 : index
    %c0_84 = arith.constant 0 : index
    %239 = vector.load %arg7[%c1_82, %c0_83, %c0_84] : memref<2x64x64xbf16, #tpu.memory_space<vmem>>, vector<1x16x64xbf16>
    %240 = vector.shape_cast %239 : vector<1x16x64xbf16> to vector<16x64xbf16>
    %cst_85 = arith.constant dense<0.000000e+00> : vector<16x64xf32>
    %241 = tpu.matmul %238, %240, %cst_85 {dimension_numbers = #tpu.dot_dimension_numbers<[1], [0], [0], [1], [0, 0, 1, 1], [], []>} : vector<16x16xbf16>, vector<16x64xbf16>, vector<16x64xf32> -> vector<16x64xf32>
    %242 = vector.extract_strided_slice %208 {offsets = [0, 16], sizes = [16, 16], strides = [1, 1]} : vector<16x64xf32> to vector<16x16xf32>
    %243 = arith.truncf %242 : vector<16x16xf32> to vector<16x16xbf16>
    %244 = vector.extract_strided_slice %216 {offsets = [0, 16], sizes = [16, 16], strides = [1, 1]} : vector<16x64xf32> to vector<16x16xf32>
    %245 = arith.truncf %244 : vector<16x16xf32> to vector<16x16xbf16>
    %cst_86 = arith.constant dense<0.000000e+00> : vector<16x16xf32>
    %246 = tpu.matmul %243, %245, %cst_86 {dimension_numbers = #tpu.dot_dimension_numbers<[1], [1], [0], [0], [0, 0, 1, 0], [], []>} : vector<16x16xbf16>, vector<16x16xbf16>, vector<16x16xf32> -> vector<16x16xf32>
    %247 = arith.addf %246, %14 : vector<16x16xf32>
    %cst_87 = arith.constant dense<0xFF800000> : vector<16xf32>
    %248 = vector.multi_reduction <maximumf>, %247, %cst_87 [1] : vector<16x16xf32> to vector<16xf32>
    %249 = vector.shape_cast %248 : vector<16xf32> to vector<16x1xf32>
    %250 = vector.broadcast %249 : vector<16x1xf32> to vector<16x16xf32>
    %251 = arith.subf %247, %250 : vector<16x16xf32>
    %252 = math.exp %251 : vector<16x16xf32>
    %cst_88 = arith.constant dense<0.000000e+00> : vector<16xf32>
    %253 = vector.multi_reduction <add>, %252, %cst_88 [1] : vector<16x16xf32> to vector<16xf32>
    %254 = vector.shape_cast %253 : vector<16xf32> to vector<16x1xf32>
    %255 = tpu.reciprocal %254 {approx = true} : vector<16x1xf32> -> vector<16x1xf32>
    %256 = vector.broadcast %255 : vector<16x1xf32> to vector<16x16xf32>
    %257 = arith.mulf %252, %256 : vector<16x16xf32>
    %258 = arith.truncf %257 : vector<16x16xf32> to vector<16x16xbf16>
    %259 = vector.extract_strided_slice %217 {offsets = [0, 16], sizes = [16, 16], strides = [1, 1]} : vector<16x64xf32> to vector<16x16xf32>
    %260 = arith.truncf %259 : vector<16x16xf32> to vector<16x16xbf16>
    %cst_89 = arith.constant dense<0.000000e+00> : vector<16x16xf32>
    %261 = tpu.matmul %258, %260, %cst_89 {dimension_numbers = #tpu.dot_dimension_numbers<[1], [0], [0], [1], [0, 0, 1, 1], [], []>} : vector<16x16xbf16>, vector<16x16xbf16>, vector<16x16xf32> -> vector<16x16xf32>
    %262 = arith.truncf %261 : vector<16x16xf32> to vector<16x16xbf16>
    %c1_90 = arith.constant 1 : index
    %c16_91 = arith.constant 16 : index
    %c0_92 = arith.constant 0 : index
    %263 = vector.load %arg7[%c1_90, %c16_91, %c0_92] : memref<2x64x64xbf16, #tpu.memory_space<vmem>>, vector<1x16x64xbf16>
    %264 = vector.shape_cast %263 : vector<1x16x64xbf16> to vector<16x64xbf16>
    %cst_93 = arith.constant dense<0.000000e+00> : vector<16x64xf32>
    %265 = tpu.matmul %262, %264, %cst_93 {dimension_numbers = #tpu.dot_dimension_numbers<[1], [0], [0], [1], [0, 0, 1, 1], [], []>} : vector<16x16xbf16>, vector<16x64xbf16>, vector<16x64xf32> -> vector<16x64xf32>
    %266 = arith.addf %241, %265 : vector<16x64xf32>
    %267 = vector.extract_strided_slice %208 {offsets = [0, 32], sizes = [16, 16], strides = [1, 1]} : vector<16x64xf32> to vector<16x16xf32>
    %268 = arith.truncf %267 : vector<16x16xf32> to vector<16x16xbf16>
    %269 = vector.extract_strided_slice %216 {offsets = [0, 32], sizes = [16, 16], strides = [1, 1]} : vector<16x64xf32> to vector<16x16xf32>
    %270 = arith.truncf %269 : vector<16x16xf32> to vector<16x16xbf16>
    %cst_94 = arith.constant dense<0.000000e+00> : vector<16x16xf32>
    %271 = tpu.matmul %268, %270, %cst_94 {dimension_numbers = #tpu.dot_dimension_numbers<[1], [1], [0], [0], [0, 0, 1, 0], [], []>} : vector<16x16xbf16>, vector<16x16xbf16>, vector<16x16xf32> -> vector<16x16xf32>
    %272 = arith.addf %271, %14 : vector<16x16xf32>
    %cst_95 = arith.constant dense<0xFF800000> : vector<16xf32>
    %273 = vector.multi_reduction <maximumf>, %272, %cst_95 [1] : vector<16x16xf32> to vector<16xf32>
    %274 = vector.shape_cast %273 : vector<16xf32> to vector<16x1xf32>
    %275 = vector.broadcast %274 : vector<16x1xf32> to vector<16x16xf32>
    %276 = arith.subf %272, %275 : vector<16x16xf32>
    %277 = math.exp %276 : vector<16x16xf32>
    %cst_96 = arith.constant dense<0.000000e+00> : vector<16xf32>
    %278 = vector.multi_reduction <add>, %277, %cst_96 [1] : vector<16x16xf32> to vector<16xf32>
    %279 = vector.shape_cast %278 : vector<16xf32> to vector<16x1xf32>
    %280 = tpu.reciprocal %279 {approx = true} : vector<16x1xf32> -> vector<16x1xf32>
    %281 = vector.broadcast %280 : vector<16x1xf32> to vector<16x16xf32>
    %282 = arith.mulf %277, %281 : vector<16x16xf32>
    %283 = arith.truncf %282 : vector<16x16xf32> to vector<16x16xbf16>
    %284 = vector.extract_strided_slice %217 {offsets = [0, 32], sizes = [16, 16], strides = [1, 1]} : vector<16x64xf32> to vector<16x16xf32>
    %285 = arith.truncf %284 : vector<16x16xf32> to vector<16x16xbf16>
    %cst_97 = arith.constant dense<0.000000e+00> : vector<16x16xf32>
    %286 = tpu.matmul %283, %285, %cst_97 {dimension_numbers = #tpu.dot_dimension_numbers<[1], [0], [0], [1], [0, 0, 1, 1], [], []>} : vector<16x16xbf16>, vector<16x16xbf16>, vector<16x16xf32> -> vector<16x16xf32>
    %287 = arith.truncf %286 : vector<16x16xf32> to vector<16x16xbf16>
    %c1_98 = arith.constant 1 : index
    %c32_99 = arith.constant 32 : index
    %c0_100 = arith.constant 0 : index
    %288 = vector.load %arg7[%c1_98, %c32_99, %c0_100] : memref<2x64x64xbf16, #tpu.memory_space<vmem>>, vector<1x16x64xbf16>
    %289 = vector.shape_cast %288 : vector<1x16x64xbf16> to vector<16x64xbf16>
    %cst_101 = arith.constant dense<0.000000e+00> : vector<16x64xf32>
    %290 = tpu.matmul %287, %289, %cst_101 {dimension_numbers = #tpu.dot_dimension_numbers<[1], [0], [0], [1], [0, 0, 1, 1], [], []>} : vector<16x16xbf16>, vector<16x64xbf16>, vector<16x64xf32> -> vector<16x64xf32>
    %291 = arith.addf %266, %290 : vector<16x64xf32>
    %292 = vector.extract_strided_slice %208 {offsets = [0, 48], sizes = [16, 16], strides = [1, 1]} : vector<16x64xf32> to vector<16x16xf32>
    %293 = arith.truncf %292 : vector<16x16xf32> to vector<16x16xbf16>
    %294 = vector.extract_strided_slice %216 {offsets = [0, 48], sizes = [16, 16], strides = [1, 1]} : vector<16x64xf32> to vector<16x16xf32>
    %295 = arith.truncf %294 : vector<16x16xf32> to vector<16x16xbf16>
    %cst_102 = arith.constant dense<0.000000e+00> : vector<16x16xf32>
    %296 = tpu.matmul %293, %295, %cst_102 {dimension_numbers = #tpu.dot_dimension_numbers<[1], [1], [0], [0], [0, 0, 1, 0], [], []>} : vector<16x16xbf16>, vector<16x16xbf16>, vector<16x16xf32> -> vector<16x16xf32>
    %297 = arith.addf %296, %14 : vector<16x16xf32>
    %cst_103 = arith.constant dense<0xFF800000> : vector<16xf32>
    %298 = vector.multi_reduction <maximumf>, %297, %cst_103 [1] : vector<16x16xf32> to vector<16xf32>
    %299 = vector.shape_cast %298 : vector<16xf32> to vector<16x1xf32>
    %300 = vector.broadcast %299 : vector<16x1xf32> to vector<16x16xf32>
    %301 = arith.subf %297, %300 : vector<16x16xf32>
    %302 = math.exp %301 : vector<16x16xf32>
    %cst_104 = arith.constant dense<0.000000e+00> : vector<16xf32>
    %303 = vector.multi_reduction <add>, %302, %cst_104 [1] : vector<16x16xf32> to vector<16xf32>
    %304 = vector.shape_cast %303 : vector<16xf32> to vector<16x1xf32>
    %305 = tpu.reciprocal %304 {approx = true} : vector<16x1xf32> -> vector<16x1xf32>
    %306 = vector.broadcast %305 : vector<16x1xf32> to vector<16x16xf32>
    %307 = arith.mulf %302, %306 : vector<16x16xf32>
    %308 = arith.truncf %307 : vector<16x16xf32> to vector<16x16xbf16>
    %309 = vector.extract_strided_slice %217 {offsets = [0, 48], sizes = [16, 16], strides = [1, 1]} : vector<16x64xf32> to vector<16x16xf32>
    %310 = arith.truncf %309 : vector<16x16xf32> to vector<16x16xbf16>
    %cst_105 = arith.constant dense<0.000000e+00> : vector<16x16xf32>
    %311 = tpu.matmul %308, %310, %cst_105 {dimension_numbers = #tpu.dot_dimension_numbers<[1], [0], [0], [1], [0, 0, 1, 1], [], []>} : vector<16x16xbf16>, vector<16x16xbf16>, vector<16x16xf32> -> vector<16x16xf32>
    %312 = arith.truncf %311 : vector<16x16xf32> to vector<16x16xbf16>
    %c1_106 = arith.constant 1 : index
    %c48_107 = arith.constant 48 : index
    %c0_108 = arith.constant 0 : index
    %313 = vector.load %arg7[%c1_106, %c48_107, %c0_108] : memref<2x64x64xbf16, #tpu.memory_space<vmem>>, vector<1x16x64xbf16>
    %314 = vector.shape_cast %313 : vector<1x16x64xbf16> to vector<16x64xbf16>
    %cst_109 = arith.constant dense<0.000000e+00> : vector<16x64xf32>
    %315 = tpu.matmul %312, %314, %cst_109 {dimension_numbers = #tpu.dot_dimension_numbers<[1], [0], [0], [1], [0, 0, 1, 1], [], []>} : vector<16x16xbf16>, vector<16x64xbf16>, vector<16x64xf32> -> vector<16x64xf32>
    %316 = arith.addf %291, %315 : vector<16x64xf32>
    %317 = arith.addf %181, %316 : vector<16x64xf32>
    %c3 = arith.constant 3 : index
    %c0_110 = arith.constant 0 : index
    %318 = vector.load %arg10[%c3, %c0_110] : memref<5x64xf32, #tpu.memory_space<vmem>>, vector<1x64xf32>
    %319 = arith.mulf %317, %317 : vector<16x64xf32>
    %cst_111 = arith.constant dense<0.000000e+00> : vector<16xf32>
    %320 = vector.multi_reduction <add>, %319, %cst_111 [1] : vector<16x64xf32> to vector<16xf32>
    %321 = vector.shape_cast %320 : vector<16xf32> to vector<16x1xf32>
    %cst_112 = arith.constant 6.400000e+01 : f32
    %322 = vector.broadcast %cst_112 : f32 to vector<16x1xf32>
    %323 = arith.divf %321, %322 : vector<16x1xf32>
    %cst_113 = arith.constant 9.99999974E-6 : f32
    %324 = vector.broadcast %cst_113 : f32 to vector<16x1xf32>
    %325 = arith.addf %323, %324 : vector<16x1xf32>
    %326 = math.rsqrt %325 : vector<16x1xf32>
    %327 = vector.broadcast %326 : vector<16x1xf32> to vector<16x64xf32>
    %328 = arith.mulf %317, %327 : vector<16x64xf32>
    %329 = vector.broadcast %318 : vector<1x64xf32> to vector<16x64xf32>
    %330 = arith.mulf %328, %329 : vector<16x64xf32>
    %331 = arith.truncf %330 : vector<16x64xf32> to vector<16x64xbf16>
    %c1_114 = arith.constant 1 : index
    %c0_115 = arith.constant 0 : index
    %c0_116 = arith.constant 0 : index
    %332 = vector.load %arg8[%c1_114, %c0_115, %c0_116] : memref<2x64x256xbf16, #tpu.memory_space<vmem>>, vector<1x64x256xbf16>
    %333 = vector.shape_cast %332 : vector<1x64x256xbf16> to vector<64x256xbf16>
    %cst_117 = arith.constant dense<0.000000e+00> : vector<16x256xf32>
    %334 = tpu.matmul %331, %333, %cst_117 {dimension_numbers = #tpu.dot_dimension_numbers<[1], [0], [0], [1], [0, 0, 1, 1], [], []>} : vector<16x64xbf16>, vector<64x256xbf16>, vector<16x256xf32> -> vector<16x256xf32>
    %335 = vector.extract_strided_slice %334 {offsets = [0, 0], sizes = [16, 128], strides = [1, 1]} : vector<16x256xf32> to vector<16x128xf32>
    %336 = vector.extract_strided_slice %334 {offsets = [0, 128], sizes = [16, 128], strides = [1, 1]} : vector<16x256xf32> to vector<16x128xf32>
    %337 = arith.negf %335 : vector<16x128xf32>
    %338 = math.exp %337 : vector<16x128xf32>
    %cst_118 = arith.constant 1.000000e+00 : f32
    %339 = vector.broadcast %cst_118 : f32 to vector<16x128xf32>
    %340 = arith.addf %339, %338 : vector<16x128xf32>
    %341 = arith.divf %339, %340 : vector<16x128xf32>
    %342 = arith.mulf %335, %341 : vector<16x128xf32>
    %343 = arith.mulf %342, %336 : vector<16x128xf32>
    %344 = arith.truncf %343 : vector<16x128xf32> to vector<16x128xbf16>
    %c1_119 = arith.constant 1 : index
    %c0_120 = arith.constant 0 : index
    %c0_121 = arith.constant 0 : index
    %345 = vector.load %arg9[%c1_119, %c0_120, %c0_121] : memref<2x128x64xbf16, #tpu.memory_space<vmem>>, vector<1x128x64xbf16>
    %346 = vector.shape_cast %345 : vector<1x128x64xbf16> to vector<128x64xbf16>
    %cst_122 = arith.constant dense<0.000000e+00> : vector<16x64xf32>
    %347 = tpu.matmul %344, %346, %cst_122 {dimension_numbers = #tpu.dot_dimension_numbers<[1], [0], [0], [1], [0, 0, 1, 1], [], []>} : vector<16x128xbf16>, vector<128x64xbf16>, vector<16x64xf32> -> vector<16x64xf32>
    %348 = arith.addf %317, %347 : vector<16x64xf32>
    %c4 = arith.constant 4 : index
    %c0_123 = arith.constant 0 : index
    %349 = vector.load %arg10[%c4, %c0_123] : memref<5x64xf32, #tpu.memory_space<vmem>>, vector<1x64xf32>
    %350 = arith.mulf %348, %348 : vector<16x64xf32>
    %cst_124 = arith.constant dense<0.000000e+00> : vector<16xf32>
    %351 = vector.multi_reduction <add>, %350, %cst_124 [1] : vector<16x64xf32> to vector<16xf32>
    %352 = vector.shape_cast %351 : vector<16xf32> to vector<16x1xf32>
    %cst_125 = arith.constant 6.400000e+01 : f32
    %353 = vector.broadcast %cst_125 : f32 to vector<16x1xf32>
    %354 = arith.divf %352, %353 : vector<16x1xf32>
    %cst_126 = arith.constant 9.99999974E-6 : f32
    %355 = vector.broadcast %cst_126 : f32 to vector<16x1xf32>
    %356 = arith.addf %354, %355 : vector<16x1xf32>
    %357 = math.rsqrt %356 : vector<16x1xf32>
    %358 = vector.broadcast %357 : vector<16x1xf32> to vector<16x64xf32>
    %359 = arith.mulf %348, %358 : vector<16x64xf32>
    %360 = vector.broadcast %349 : vector<1x64xf32> to vector<16x64xf32>
    %361 = arith.mulf %359, %360 : vector<16x64xf32>
    %362 = arith.truncf %361 : vector<16x64xf32> to vector<16x64xbf16>
    %c0_127 = arith.constant 0 : index
    %c0_128 = arith.constant 0 : index
    %363 = vector.load %arg11[%c0_127, %c0_128] : memref<64x256xbf16, #tpu.memory_space<vmem>>, vector<64x256xbf16>
    %cst_129 = arith.constant dense<0.000000e+00> : vector<16x256xf32>
    %364 = tpu.matmul %362, %363, %cst_129 {dimension_numbers = #tpu.dot_dimension_numbers<[1], [0], [0], [1], [0, 0, 1, 1], [], []>} : vector<16x64xbf16>, vector<64x256xbf16>, vector<16x256xf32> -> vector<16x256xf32>
    %c0_130 = arith.constant 0 : index
    %c0_131 = arith.constant 0 : index
    %365 = vector.load %arg12[%c0_130, %c0_131] : memref<16x256xf32, #tpu.memory_space<vmem>>, vector<16x256xf32>
    tpu.vector_store %arg12[%c0_130, %c0_131], %364 {strides = array<i32>} : memref<16x256xf32, #tpu.memory_space<vmem>>, vector<16x256xf32>,
    return
  }
}

</mosaic_0001>

<bundles_post_ra>
// kernel: forward.1
= control target key start
LH: loop header
LB: loop body
LE: loop exit
PB: predicated region body
PF: predicated region fallthrough
CT: control target
= control target key end

     0   :  { %17 = vsyncpa [#allocation3], 0  ;;  %s4323_s0 = inlined_call_operand.vmem [shape: s32[16,1], index: 0, kind: input, shape index: {}]   ;;  %s4324_s1 = inlined_call_operand.hbm [shape: f32[16,64], index: 1, kind: input, shape index: {}]   ;;  %s4325_s2 = inlined_call_operand.vmem [shape: f32[16,64], index: 2, kind: input, shape index: {}]   ;;  %s4326_s3 = inlined_call_operand.vmem [shape: f32[16,64], index: 3, kind: input, shape index: {}]   ;;  %s4327_s4 = inlined_call_operand.vmem [shape: f32[16,16], index: 4, kind: input, shape index: {}]   ;;  %s4328_s5 = inlined_call_operand.vmem [shape: bf16[256,64], index: 5, kind: input, shape index: {}]   ;;  %s4329_s6 = inlined_call_operand.vmem [shape: bf16[2,64,192], index: 6, kind: input, shape index: {}]   ;;  %s4330_s7 = inlined_call_operand.vmem [shape: bf16[2,64,64], index: 7, kind: input, shape index: {}]   ;;  %s4331_s8 = inlined_call_operand.vmem [shape: bf16[2,64,256], index: 8, kind: input, shape index: {}]   ;;  %s4332_s9 = inlined_call_operand.vmem [shape: bf16[2,128,64], index: 9, kind: input, shape index: {}]   ;;  %s4333_s10 = inlined_call_operand.hbm [shape: f32[5,64], index: 10, kind: input, shape index: {}]   ;;  %s4334_s11 = inlined_call_operand.hbm [shape: bf16[64,256], index: 11, kind: input, shape index: {}]   ;;  %s4335_s12 = inlined_call_operand.hbm [shape: f32[16,256], index: 12, kind: output, shape index: {}]  }
   0x1   :  { %18 = vsyncpa [#allocation6], 0 }
   0x2   :  { %19 = vsyncpa [#allocation4], 0  ;;  %s3512_s21 = smov [#allocation5]   ;;  %s3513_s23 = smov [#allocation2]  }
   0x3   :  { %s56_s22 = sshll.u32 %s3512_s21, 4  ;;  %s27_s24 = sshll.u32 %s3513_s23, 4  ;;  %s57_s22 = int_to_ptr.vmem [resolvable:$true] %s56_s22  ;;  %s3598_s24 = int_to_ptr.vmem [resolvable:$true] %s27_s24 }
   0x4   :  { %s3418_s27 = scalar_lea.hbm %s4333_s10, 128 }
   0x5   :  { %p3419_p0 = scmp.ne.s32.totalorder %s4333_s10, %s3418_s27  ;;  %p3422_p1 = scmp.lt.u32.totalorder %s3418_s27, %s4333_s10 }
   0x7   :  { %p3424_p2 = pnand %p3422_p1, %p3419_p0 }
   0x9   :  { %3427 = shalt.err (!%p3424_p2)
}
   0xa   :  { %s3428_s14 = scalar_lea.vmem %s57_s22, 128  ;;  %p3433_p4 = scmp.lt.s32.totalorder %s57_s22, %s57_s22 }
   0xb   :  { %p3429_p3 = scmp.ne.s32.totalorder %s57_s22, %s3428_s14  ;;  %p3434_p5 = scmp.lt.s32.totalorder %s3428_s14, %s3428_s14 }
   0xd   :  { %p3435_p6 = por %p3434_p5, %p3433_p4 }
   0xf   :  { %p3436_p7 = pnand %p3435_p6, %p3429_p3 }
  0x11   :  { %3439 = shalt.err (!%p3436_p7)
}
  0x12   :  { %59 = dma.hbm_to_vmem [thread:$0]  %s4333_s10, 128, %s57_s22, [#allocation6]  }
  0x13   :  { %s3440_s19 = scalar_lea.hbm %s4324_s1, 256 }
  0x14   :  { %p3441_p8 = scmp.ne.s32.totalorder %s4324_s1, %s3440_s19  ;;  %p3444_p9 = scmp.lt.u32.totalorder %s3440_s19, %s4324_s1 }
  0x16   :  { %p3446_p10 = pnand %p3444_p9, %p3441_p8 }
  0x18   :  { %3449 = shalt.err (!%p3446_p10)
}
  0x19   :  { %s3450_s26 = scalar_lea.vmem %s3598_s24, 256  ;;  %p3455_p12 = scmp.lt.s32.totalorder %s3598_s24, %s3598_s24 }
  0x1a   :  { %p3451_p11 = scmp.ne.s32.totalorder %s3598_s24, %s3450_s26  ;;  %p3456_p13 = scmp.lt.s32.totalorder %s3450_s26, %s3450_s26 }
  0x1c   :  { %p3457_p0 = por %p3456_p13, %p3455_p12 }
  0x1e   :  { %p3458_p1 = pnand %p3457_p0, %p3451_p11 }
  0x20   :  { %3461 = shalt.err (!%p3458_p1)
}
  0x21   :  { %s3514_s10 = smov 128   ;;  %s3515_s22 = smov 8  }
  0x22   :  { %33 = dma.hbm_to_vmem [thread:$0]  %s4324_s1, 256, %s3598_s24, [#allocation3], %s3514_s10, %s3514_s10, %s3515_s22  }
  0x23   :  { %s3516_s29 = smov [#allocation7]   ;;  %s3462_s15 = scalar_lea.hbm %s4334_s11, 1024 }
  0x24   :  { %s65_s30 = sshll.u32 %s3516_s29, 4  ;;  %p3463_p2 = scmp.ne.s32.totalorder %s4334_s11, %s3462_s15  ;;  %s66_s30 = int_to_ptr.vmem [resolvable:$true] %s65_s30 }
  0x25   :  { %p3466_p3 = scmp.lt.u32.totalorder %s3462_s15, %s4334_s11 }
  0x27   :  { %p3468_p4 = pnand %p3466_p3, %p3463_p2 }
  0x29   :  { %3471 = shalt.err (!%p3468_p4)
}
  0x2a   :  { %s3472_s20 = scalar_lea.vmem %s66_s30, 1024  ;;  %p3477_p6 = scmp.lt.s32.totalorder %s66_s30, %s66_s30 }
  0x2b   :  { %p3473_p5 = scmp.ne.s32.totalorder %s66_s30, %s3472_s20  ;;  %p3478_p7 = scmp.lt.s32.totalorder %s3472_s20, %s3472_s20 }
  0x2d   :  { %p3479_p8 = por %p3478_p7, %p3477_p6 }
  0x2f   :  { %p3480_p9 = pnand %p3479_p8, %p3473_p5 }
  0x31   :  { %3483 = shalt.err (!%p3480_p9)
}
  0x32   :  { %71 = dma.hbm_to_vmem [thread:$0]  %s4334_s11, 1024, %s66_s30, [#allocation6], %s3514_s10, %s3514_s10, %s3515_s22  }
  0x33   :  { %3506 = dma.done.wait [#allocation3], 256  }
  0x34   :  { %3507 = vsyncadd [#allocation3], 4294967040 }
  0x35   :  { %3508 = dma.done.wait [#allocation6], 1152  }
  0x36   :  { %3509 = vsyncadd [#allocation6], 4294966144  ;;  %v3517_v0 = vmov 0   ;;  %v82_v1 = vld [vmem:[%s4323_s0] sm:$0xff]  ;;  %v83_v2 = vld [vmem:[%s4323_s0 + $0x8] sm:$0xff]  ;;  %v84_v19 = vlaneseq  ;;  %vm287_vm6 = vcmask 523264  }
  0x37   :  { %3213 = vset.pattern.permute.xlu0 %v3517_v0  ;;  %393 = vmatprep.mubr.bf16.mxu1 %v3517_v0  ;;  %v3214_v3 = vld [vmem:[%s4328_s5 + $0x40] sm:$0xff]   ;;  %v3216_v5 = vld [vmem:[%s4328_s5 + $0x48] sm:$0xff]   ;;  %v3218_v7 = vld [vmem:[%s4328_s5 + $0x50] sm:$0xff]   ;;  %v3518_v24 = vmov 1.0|1.0   ;;  %s3519_s30 = smov 64  }
  0x38   :  { %88 = vperm.xlu0 %3213, %v82_v1   ;;  %v3215_v4 = vld [vmem:[%s4328_s5] sm:$0xff]   ;;  %2920 = vmatprep.subr.bf16.mxu0 %v3214_v3  ;;  %v3217_v6 = vld [vmem:[%s4328_s5 + $0x8] sm:$0xff]   ;;  %v3219_v8 = vld [vmem:[%s4328_s5 + $0x10] sm:$0xff]   ;;  %v85_v20 = vand.u32 127, %v84_v19  ;;  %vm408_vm7 = vcmask 1048064   ;;  %s3520_s17 = smov 56  }
  0x39   :  { %2921 = vmatpush3.bf16.msra.mxu0 %v3215_v4  ;;  %v3220_v9 = vld [vmem:[%s4328_s5 + $0x58] sm:$0xff]   ;;  %v3222_v11 = vld [vmem:[%s4328_s5 + $0x60] sm:$0xff]   ;;  %v3224_v13 = vld [vmem:[%s4328_s5 + $0x68] sm:$0xff]   ;;  %s3522_s19 = smov 72   ;;  %vm3524_vm8 = vmmov 0   ;;  %s3525_s20 = smov 48  }
  0x3a   :  { %2922 = vmatprep.subr.bf16.mxu0 %v3216_v5  ;;  %v3221_v10 = vld [vmem:[%s4328_s5 + $0x18] sm:$0xff]   ;;  %v3223_v12 = vld [vmem:[%s4328_s5 + $0x20] sm:$0xff]   ;;  %v3225_v14 = vld [vmem:[%s4328_s5 + $0x28] sm:$0xff]   ;;  %v86_v22 = vadd.s32 128, %v85_v20  ;;  %s3526_s1 = smov 112   ;;  %vm520_vm9 = vcmask 130048  }
  0x3b   :  { %v3226_v15 = vld [vmem:[%s4328_s5 + $0x70] sm:$0xff]   ;;  %v3228_v17 = vld [vmem:[%s4328_s5 + $0x78] sm:$0xff]   ;;  %v3230_v35 = vld [vmem:[%s4329_s6 + $0x4] ss:$8 sps:$4 sm:$0xff]   ;;  %s3527_s26 = smov 96   ;;  %s3528_s27 = smov 32  }
  0x3c   :  { %91 = vperm.xlu0 %3213, %v83_v2   ;;  %v3227_v16 = vld [vmem:[%s4328_s5 + $0x30] sm:$0xff]   ;;  %v3229_v18 = vld [vmem:[%s4328_s5 + $0x38] sm:$0xff]   ;;  %v3232_v36 = vld [vmem:[%s4329_s6] ss:$8 sps:$4 sm:$0xff]   ;;  %361 = vmatprep.subr.bf16.mxu1 %v3230_v35  ;;  %s3529_s13 = smov 16   ;;  %s3530_s14 = smov 80  }
  0x3d   :  { %2923 = vmatpush3.bf16.msra.mxu0 %v3217_v6  ;;  %v3233_v37 = vld [vmem:[%s4329_s6 + $0x14] ss:$8 sps:$4 sm:$0xff]   ;;  %362 = vmatpush1.bf16.msra.mxu1 %v3232_v36  ;;  %v3235_v38 = vld [vmem:[%s4329_s6 + $0x10] ss:$8 sps:$4 sm:$0xff]   ;;  %v3236_v39 = vld [vmem:[%s4329_s6 + $0x24] ss:$8 sps:$4 sm:$0xff]  }
  0x3e   :  { %2924 = vmatprep.subr.bf16.mxu0 %v3218_v7  ;;  %363 = vmatprep.subr.bf16.mxu1 %v3233_v37  ;;  %v3238_v40 = vld [vmem:[%s4329_s6 + $0x20] ss:$8 sps:$4 sm:$0xff]   ;;  %v3239_v41 = vld [vmem:[%s4329_s6 + $0x34] ss:$8 sps:$4 sm:$0xff]   ;;  %v3241_v42 = vld [vmem:[%s4329_s6 + $0x30] ss:$8 sps:$4 sm:$0xff]  }
  0x3f   :  { %v2778_v52 = vld [vmem:[#allocation5] ss:$0 sm:$0xff]  ;;  %v278_v62 = vld [vmem:[%s4325_s2] sm:$0xff]  ;;  %v279_v4 = vld [vmem:[%s4325_s2 + $0x8] sm:$0xff] }
  0x40   :  { %v280_v7 = vld [vmem:[%s4326_s3] sm:$0xff] }
  0x41   :  { %2925 = vmatpush3.bf16.msra.mxu0 %v3219_v8  ;;  %364 = vmatpush1.bf16.msra.mxu1 %v3235_v38 }
  0x42   :  { %2926 = vmatprep.subr.bf16.mxu0 %v3220_v9  ;;  %365 = vmatprep.subr.bf16.mxu1 %v3236_v39 }
  0x45   :  { %2927 = vmatpush3.bf16.msra.mxu0 %v3221_v10  ;;  %366 = vmatpush1.bf16.msra.mxu1 %v3238_v40  ;;  %v281_v10 = vld [vmem:[%s4326_s3 + $0x8] sm:$0xff]  ;;  %s3521_s3 = smov 120  }
  0x46   :  { %2928 = vmatprep.subr.bf16.mxu0 %v3222_v11  ;;  %367 = vmatprep.subr.bf16.mxu1 %v3239_v41 }
  0x49   :  { %2929 = vmatpush3.bf16.msra.mxu0 %v3223_v12  ;;  %368 = vmatpush1.bf16.msra.mxu1 %v3241_v42  ;;  %v3523_v42 = vmov 0.0  }
  0x4a   :  { %2930 = vmatprep.subr.bf16.mxu0 %v3224_v13  ;;  %3008 = vmatprep.subr.bf16.mxu1 %v3523_v42 }
  0x4d   :  { %2931 = vmatpush3.bf16.msra.mxu0 %v3225_v14  ;;  %v276_v14 = vld [vmem:[#allocation2] sm:$0xff] }
  0x4e   :  { %2932 = vmatprep.subr.bf16.mxu0 %v3226_v15 }
  0x51   :  { %2933 = vmatpush3.bf16.msra.mxu0 %v3227_v16  ;;  %v277_v16 = vld [vmem:[#allocation2 + $0x8] sm:$0xff] }
  0x52   :  { %2934 = vmatprep.subr.bf16.mxu0 %v3228_v17 }
  0x55   :  { %2935 = vmatpush3.bf16.msra.mxu0 %v3229_v18 }
  0x56   :  { %3020 = vmatprep.subr.bf16.mxu0 %v3523_v42 }
  0xb7   :  { %v89_v21 = vpop.permute.xlu0 %88 }
  0xb8   :  { %vm94_vm1 = vcmp.eq.s32.totalorder %v86_v22, %v89_v21  ;;  %vm93_vm3 = vcmp.eq.s32.totalorder %v85_v20, %v89_v21 }
  0xbb   :  { %v92_v23 = vpop.permute.xlu0 %91 }
  0xbc   :  { %vm95_vm0 = vcmp.eq.s32.totalorder %v85_v20, %v92_v23  ;;  %vm96_vm2 = vcmp.eq.s32.totalorder %v86_v22, %v92_v23 }
  0xbd   :  { %vm2774_vm4 = vmpackc.low %vm96_vm2, %vm94_vm1 }
  0xbe   :  { %2775 = vmatprep.mubr.msk.bf16.mxu0 %vm2774_vm4, %v3518_v24  ;;  %vm2776_vm5 = vmpackc.low %vm95_vm0, %vm93_vm3 }
  0xbf   :  { %2777 = vmatmul.mubr.msk.bf16.vlgmr.msra.gmra.mrb[0].mxu0 %vm2776_vm5, %v3518_v24 }
  0xc0   :  { %3022 = vmatprep.mubr.msk.bf16.mxu0 %vm3524_vm8, %v3523_v42 }
 0x192   :  { %v2936_v25 = vpop.f32.mrb[0].mxu0 }
 0x193   :  { %v2937_v26 = vpop.f32.mrb[1].mxu0 }
 0x194   :  { %v3699_v27 = vadd.f32 %v2937_v26, %v2936_v25  ;;  %v2939_v28 = vpop.f32.mrb[2].mxu0 }
 0x195   :  { %v2940_v29 = vpop.f32.mrb[3].mxu0 }
 0x196   :  { %v3701_v30 = vadd.f32 %v2940_v29, %v2939_v28  ;;  %v285_v31 = vmul.f32 %v3699_v27, %v3699_v27 }
 0x198   :  { %v288_v32 = vsel %vm287_vm6, %v285_v31, 0.0  ;;  %v286_v33 = vmul.f32 %v3701_v30, %v3701_v30 }
 0x199   :  { %289 = vadd.xlane.f32.xlu1 %v288_v32 }
 0x19a   :  { %v291_v34 = vsel %vm287_vm6, %v286_v33, 0.0 }
 0x19d   :  { %292 = vadd.xlane.f32.xlu1 %v291_v34 }
 0x226   :  { %v290_v43 = vpop.xlane.xlu1 %289 }
 0x227   :  { %v295_v44 = vmul.f32 0.015625, %v290_v43 }
 0x229   :  { %v297_v45 = vadd.f32 1e-05, %v295_v44 }
 0x22a   :  { %v293_v46 = vpop.xlane.xlu1 %292 }
 0x22b   :  { %3314 = vrsqrt.f32 %v297_v45  ;;  %v296_v47 = vmul.f32 0.015625, %v293_v46 }
 0x22d   :  { %v298_v48 = vadd.f32 1e-05, %v296_v47 }
 0x22f   :  { %3316 = vrsqrt.f32 %v298_v48 }
 0x235   :  { %v3315_v49 = vpop.eup %3314 }
 0x236   :  { %v301_v50 = vmul.f32 %v3315_v49, %v3699_v27 }
 0x238   :  { %v307_v54 = vmul.f32 %v2778_v52, %v301_v50 }
 0x239   :  { %v3317_v51 = vpop.eup %3316 }
 0x23a   :  { %v302_v53 = vmul.f32 %v3317_v51, %v3701_v30 }
 0x23c   :  { %v308_v55 = vmul.f32 %v2778_v52, %v302_v53 }
 0x23e   :  { %v309_v56 = vpack.c.bf16 %v308_v55, %v307_v54 }
 0x240   :  { %2787 = vmatmul.mubr.msk.bf16.vlgmr.msra.gmra.mrb[0].mxu1 %vm287_vm6, %v309_v56 }
 0x241   :  { %3010 = vmatprep.mubr.msk.bf16.mxu1 %vm3524_vm8, %v3523_v42 }
 0x313   :  { %v3736_v57 = vpop.f32.mrb[0].mxu1 }
 0x314   :  { %473 = vrot.lane.b32.xlu0 %v3736_v57, %s3519_s30  ;;  %v397_v58 = vpop.f32.mrb[1].mxu1  ;;  %v3753_v2 = vmul.f32 0.25, %v3736_v57 }
 0x315   :  { %v3740_v59 = vpop.f32.mrb[2].mxu1 }
 0x316   :  { %475 = vrot.lane.b32.xlu1 %v3740_v59, %s3519_s30  ;;  %v401_v60 = vpop.f32.mrb[3].mxu1  ;;  %v3758_v3 = vmul.f32 0.25, %v3740_v59  ;;  %v406_v55 = vmul.f32 %v3753_v2, %v276_v14 }
 0x317   :  { %v3744_v61 = vpack.c.bf16 %v401_v60, %v397_v58 }
 0x318   :  { %v407_v56 = vmul.f32 %v3758_v3, %v277_v16 }
 0x31a   :  { %423 = vrot.lane.b32.xlu1 %v278_v62, %s3515_s22 }
 0x386   :  { %v474_v63 = vpop.permute.xlu0 %473 }
 0x387   :  { %479 = vrot.lane.b32.xlu0 %v474_v63, %s3519_s30 }
 0x388   :  { %v476_v1 = vpop.permute.xlu1 %475 }
 0x38b   :  { %482 = vrot.lane.b32.xlu0 %v476_v1, %s3519_s30 }
 0x38c   :  { %v3786_v17 = vpop.permute.xlu1 %423 }
 0x38f   :  { %409 = vrot.lane.b32.xlu0 %v3753_v2, %s3519_s30 }
 0x393   :  { %412 = vrot.lane.b32.xlu0 %v3758_v3, %s3519_s30 }
 0x397   :  { %425 = vrot.lane.b32.xlu0 %v279_v4, %s3515_s22 }
 0x3f9   :  { %v480_v5 = vpop.permute.xlu0 %479 }
 0x3fa   :  { %v481_v6 = vsel %vm408_vm7, %v480_v5, %v474_v63 }
 0x3fb   :  { %485 = vrot.lane.b32.xlu1 %v481_v6, %s3519_s30 }
 0x3fd   :  { %v483_v8 = vpop.permute.xlu0 %482 }
 0x3fe   :  { %v484_v9 = vsel %vm408_vm7, %v483_v8, %v476_v1 }
 0x3ff   :  { %443 = vrot.lane.b32.xlu1 %v280_v7, %s3520_s17  ;;  %487 = vrot.lane.b32.xlu0 %v484_v9, %s3519_s30  ;;  %v3858_v7 = vld [vmem:[%s4327_s4] sm:$0xff] }
 0x401   :  { %v410_v11 = vpop.permute.xlu0 %409 }
 0x402   :  { %v411_v12 = vsel %vm408_vm7, %v410_v11, %v3753_v2 }
 0x403   :  { %415 = vrot.lane.b32.xlu1 %v411_v12, %s3519_s30  ;;  %445 = vrot.lane.b32.xlu0 %v281_v10, %s3520_s17  ;;  %v3863_v10 = vld [vmem:[%s4327_s4 + $0x8] sm:$0xff] }
 0x405   :  { %v413_v13 = vpop.permute.xlu0 %412 }
 0x406   :  { %v414_v15 = vsel %vm408_vm7, %v413_v13, %v3758_v3 }
 0x407   :  { %463 = vrot.lane.b32.xlu1 %v276_v14, %s3519_s30  ;;  %417 = vrot.lane.b32.xlu0 %v414_v15, %s3519_s30 }
 0x409   :  { %v3788_v18 = vpop.permute.xlu0 %425 }
 0x40b   :  { %465 = vrot.lane.b32.xlu0 %v277_v16, %s3519_s30 }
 0x46d   :  { %v486_v19 = vpop.permute.xlu1 %485 }
 0x46e   :  { %v489_v20 = vsel %vm408_vm7, %v486_v19, %v474_v63 }
 0x46f   :  { %v491_v21 = vmul.f32 %v489_v20, %v3786_v17 }
 0x471   :  { %v3792_v22 = vpop.permute.xlu1 %443  ;;  %495 = vrot.lane.b32.xlu1 %v491_v21, %s3520_s17  ;;  %v488_v23 = vpop.permute.xlu0 %487 }
 0x472   :  { %v490_v24 = vsel %vm408_vm7, %v488_v23, %v476_v1  ;;  %v503_v25 = vmul.f32 %v489_v20, %v3792_v22 }
 0x473   :  { %v492_v26 = vmul.f32 %v490_v24, %v3788_v18 }
 0x475   :  { %507 = vrot.lane.b32.xlu1 %v503_v25, %s3515_s22  ;;  %v416_v28 = vpop.permute.xlu1 %415  ;;  %497 = vrot.lane.b32.xlu0 %v492_v26, %s3520_s17  ;;  %v3800_v29 = vpop.permute.xlu0 %445 }
 0x476   :  { %v419_v31 = vsel %vm408_vm7, %v416_v28, %v3753_v2  ;;  %v504_v32 = vmul.f32 %v490_v24, %v3800_v29 }
 0x477   :  { %v429_v33 = vmul.f32 %v3786_v17, %v419_v31  ;;  %v449_v36 = vmul.f32 %v3792_v22, %v419_v31 }
 0x479   :  { %433 = vrot.lane.b32.xlu1 %v429_v33, %s3521_s3  ;;  %509 = vrot.lane.b32.xlu0 %v504_v32, %s3515_s22  ;;  %v418_v34 = vpop.permute.xlu0 %417  ;;  %v3816_v39 = vpop.permute.xlu1 %463 }
 0x47a   :  { %v420_v35 = vsel %vm408_vm7, %v418_v34, %v3758_v3  ;;  %v469_v45 = vmul.f32 %v3816_v39, %v3736_v57 }
 0x47b   :  { %v430_v37 = vmul.f32 %v3788_v18, %v420_v35  ;;  %v450_v38 = vmul.f32 %v3800_v29, %v420_v35 }
 0x47d   :  { %453 = vrot.lane.b32.xlu1 %v449_v36, %s3522_s19  ;;  %435 = vrot.lane.b32.xlu0 %v430_v37, %s3521_s3  ;;  %v3818_v40 = vpop.permute.xlu0 %465 }
 0x47e   :  { %v470_v46 = vmul.f32 %v3818_v40, %v3740_v59 }
 0x481   :  { %455 = vrot.lane.b32.xlu0 %v450_v38, %s3522_s19 }
 0x4e3   :  { %v496_v41 = vpop.permute.xlu1 %495 }
 0x4e4   :  { %v501_v47 = vadd.f32 %v496_v41, %v469_v45 }
 0x4e7   :  { %v508_v43 = vpop.permute.xlu1 %507  ;;  %v498_v44 = vpop.permute.xlu0 %497 }
 0x4e8   :  { %v502_v48 = vadd.f32 %v498_v44, %v470_v46  ;;  %v513_v51 = vadd.f32 %v508_v43, %v501_v47 }
 0x4eb   :  { %v434_v49 = vpop.permute.xlu1 %433  ;;  %v510_v50 = vpop.permute.xlu0 %509 }
 0x4ec   :  { %v514_v52 = vadd.f32 %v510_v50, %v502_v48  ;;  %v439_v58 = vadd.f32 %v434_v49, %v406_v55 }
 0x4ee   :  { %v3830_v53 = vpack.c.bf16 %v514_v52, %v513_v51 }
 0x4ef   :  { %v436_v54 = vpop.permute.xlu0 %435  ;;  %v454_v57 = vpop.permute.xlu1 %453 }
 0x4f0   :  { %642 = vrot.lane.b32.xlu0 %v3830_v53, %s3525_s20  ;;  %518 = vrot.lane.b32.xlu1 %v3830_v53, %s3519_s30  ;;  %v440_v59 = vadd.f32 %v436_v54, %v407_v56  ;;  %v459_v62 = vadd.f32 %v454_v57, %v439_v58 }
 0x4f3   :  { %v456_v60 = vpop.permute.xlu0 %455 }
 0x4f4   :  { %v460_v63 = vadd.f32 %v456_v60, %v440_v59 }
 0x4f6   :  { %v3838_v1 = vpack.c.bf16 %v460_v63, %v459_v62 }
 0x4f8   :  { %640 = vrot.lane.b32.xlu1 %v3838_v1, %s3526_s1 }
 0x562   :  { %v519_v2 = vpop.permute.xlu1 %518  ;;  %v643_v3 = vpop.permute.xlu0 %642 }
 0x563   :  { %v525_v4 = vsel %vm520_vm9, %v519_v2, 0  ;;  %v648_v5 = vsel %vm520_vm9, %v643_v3, 0 }
 0x564   :  { %3009 = vmatpush3.bf16.xpose.msra.mxu1 %v525_v4  ;;  %3021 = vmatpush3.bf16.xpose.msra.mxu0 %v648_v5 }
 0x565   :  { %3014 = vmatprep.subr.bf16.mxu1 %v3523_v42  ;;  %3032 = vmatprep.subr.bf16.mxu0 %v3523_v42 }
 0x56a   :  { %v641_v6 = vpop.permute.xlu1 %640 }
 0x56b   :  { %3011 = vmatmul.mubr.msk.bf16.vlgmr.msra.gmra.mrb[4].mxu1 %vm520_vm9, %v3838_v1  ;;  %3023 = vmatmul.mubr.msk.bf16.vlgmr.msra.gmra.mrb[4].mxu0 %vm520_vm9, %v641_v6 }
 0x56c   :  { %3015 = vmatpush3.bf16.msra.mxu1 %v3744_v61  ;;  %3016 = vmatprep.mubr.msk.bf16.mxu1 %vm3524_vm8, %v3523_v42 }
 0x56d   :  { %3026 = vmatprep.subr.bf16.mxu1 %v3523_v42  ;;  %3034 = vmatprep.mubr.msk.bf16.mxu0 %vm3524_vm8, %v3523_v42 }
 0x63e   :  { %v561_v8 = vpop.f32.mrb[4].mxu1  ;;  %v684_v9 = vpop.f32.mrb[4].mxu0 }
 0x63f   :  { %v562_v11 = vadd.f32 %v561_v8, %v3858_v7  ;;  %v3012_v12 = vpop.f32.mrb[5].mxu1  ;;  %v3024_v13 = vpop.f32.mrb[5].mxu0  ;;  %v685_v16 = vadd.f32 %v684_v9, %v3858_v7 }
 0x640   :  { %v564_v14 = vpop.f32.mrb[6].mxu1  ;;  %v687_v15 = vpop.f32.mrb[6].mxu0  ;;  %v3243_v12 = vld [vmem:[%s4330_s7 + $0x8] sm:$0xff]  }
 0x641   :  { %v565_v19 = vadd.f32 %v564_v14, %v3863_v10  ;;  %v3013_v20 = vpop.f32.mrb[7].mxu1  ;;  %v3025_v21 = vpop.f32.mrb[7].mxu0  ;;  %v568_v23 = vsel %vm520_vm9, %v562_v11, -inf  ;;  %v688_v25 = vadd.f32 %v687_v15, %v3863_v10  ;;  %v691_v26 = vsel %vm520_vm9, %v685_v16, -inf  ;;  %3033 = vmatpush3.bf16.msra.mxu0 %v3243_v12 }
 0x642   :  { %569 = vmax.xlane.f32.xlu0 %v568_v23  ;;  %3044 = vmatprep.subr.bf16.mxu0 %v3523_v42 }
 0x643   :  { %v571_v24 = vsel %vm520_vm9, %v565_v19, -inf  ;;  %v694_v28 = vsel %vm520_vm9, %v688_v25, -inf }
 0x644   :  { %572 = vmax.xlane.f32.xlu1 %v571_v24 }
 0x646   :  { %692 = vmax.xlane.f32.xlu0 %v691_v26 }
 0x64a   :  { %695 = vmax.xlane.f32.xlu0 %v694_v28 }
 0x6cf   :  { %v570_v31 = vpop.xlane.xlu0 %569 }
 0x6d0   :  { %v574_v32 = vsub.f32 %v562_v11, %v570_v31  ;;  %v3242_v11 = vld [vmem:[%s4330_s7] sm:$0xff]  }
 0x6d1   :  { %v573_v33 = vpop.xlane.xlu1 %572 }
 0x6d2   :  { %v576_v34 = vmul.f32 1.442695, %v574_v32  ;;  %v575_v35 = vsub.f32 %v565_v19, %v573_v33 }
 0x6d3   :  { %v693_v36 = vpop.xlane.xlu0 %692 }
 0x6d4   :  { %3318 = vpow2.f32 %v576_v34  ;;  %v578_v37 = vmul.f32 1.442695, %v575_v35  ;;  %v697_v38 = vsub.f32 %v685_v16, %v693_v36 }
 0x6d6   :  { %3320 = vpow2.f32 %v578_v37  ;;  %v699_v41 = vmul.f32 1.442695, %v697_v38 }
 0x6d7   :  { %v696_v43 = vpop.xlane.xlu0 %695 }
 0x6d8   :  { %3322 = vpow2.f32 %v699_v41  ;;  %v698_v44 = vsub.f32 %v688_v25, %v696_v43 }
 0x6da   :  { %v701_v45 = vmul.f32 1.442695, %v698_v44 }
 0x6dc   :  { %3324 = vpow2.f32 %v701_v45 }
 0x6de   :  { %v3319_v46 = vpop.eup %3318 }
 0x6df   :  { %v580_v47 = vsel %vm520_vm9, %v3319_v46, 0.0 }
 0x6e0   :  { %v3321_v48 = vpop.eup %3320  ;;  %581 = vadd.xlane.f32.xlu1 %v580_v47 }
 0x6e1   :  { %v583_v49 = vsel %vm520_vm9, %v3321_v48, 0.0 }
 0x6e2   :  { %v3323_v50 = vpop.eup %3322  ;;  %584 = vadd.xlane.f32.xlu0 %v583_v49 }
 0x6e3   :  { %v703_v51 = vsel %vm520_vm9, %v3323_v50, 0.0 }
 0x6e4   :  { %704 = vadd.xlane.f32.xlu1 %v703_v51 }
 0x6e6   :  { %v3325_v52 = vpop.eup %3324 }
 0x6e7   :  { %v706_v54 = vsel %vm520_vm9, %v3325_v52, 0.0 }
 0x6e8   :  { %707 = vadd.xlane.f32.xlu0 %v706_v54 }
 0x6f5   :  { %715 = vrot.lane.b32.xlu1 %v3744_v61, %s3526_s1 }
 0x6f9   :  { %865 = vrot.lane.b32.xlu1 %v3838_v1, %s3527_s26 }
 0x6fe   :  { %867 = vrot.lane.b32.xlu0 %v3830_v53, %s3528_s27 }
 0x76d   :  { %v582_v55 = vpop.xlane.xlu1 %581 }
 0x76e   :  { %3326 = vrcp.f32 %v582_v55 }
 0x76f   :  { %v585_v56 = vpop.xlane.xlu0 %584 }
 0x770   :  { %3328 = vrcp.f32 %v585_v56 }
 0x771   :  { %v705_v57 = vpop.xlane.xlu1 %704 }
 0x772   :  { %3330 = vrcp.f32 %v705_v57 }
 0x775   :  { %v708_v58 = vpop.xlane.xlu0 %707  ;;  %v716_v4 = vpop.permute.xlu1 %715 }
 0x776   :  { %3332 = vrcp.f32 %v708_v58 }
 0x778   :  { %v3327_v59 = vpop.eup %3326 }
 0x779   :  { %v588_v62 = vmul.f32 %v3327_v59, %v3319_v46  ;;  %v868_v23 = vpop.permute.xlu0 %867  ;;  %v866_v31 = vpop.permute.xlu1 %865 }
 0x77a   :  { %v3329_v60 = vpop.eup %3328  ;;  %v873_v28 = vsel %vm520_vm9, %v868_v23, 0 }
 0x77b   :  { %v589_v63 = vmul.f32 %v3329_v60, %v3321_v48 }
 0x77c   :  { %v3331_v3 = vpop.eup %3330 }
 0x77d   :  { %v590_v2 = vpack.c.bf16 %v589_v63, %v588_v62  ;;  %v711_v8 = vmul.f32 %v3331_v3, %v3323_v50 }
 0x77f   :  { %3017 = vmatmul.mubr.msk.bf16.vlgmr.msra.gmra.mrb[8].mxu1 %vm520_vm9, %v590_v2 }
 0x780   :  { %v3333_v5 = vpop.eup %3332  ;;  %3027 = vmatpush3.bf16.msra.mxu1 %v716_v4  ;;  %3028 = vmatprep.mubr.msk.bf16.mxu1 %vm3524_vm8, %v3523_v42 }
 0x781   :  { %v712_v6 = vmul.f32 %v3333_v5, %v3325_v52  ;;  %3038 = vmatprep.subr.bf16.mxu1 %v3523_v42 }
 0x783   :  { %v713_v9 = vpack.c.bf16 %v712_v6, %v711_v8 }
 0x787   :  { %3029 = vmatmul.mubr.msk.bf16.vlgmr.msra.gmra.mrb[12].mxu1 %vm520_vm9, %v713_v9 }
 0x788   :  { %3040 = vmatprep.mubr.msk.bf16.mxu1 %vm3524_vm8, %v3523_v42  ;;  %3039 = vmatpush3.bf16.msra.mxu1 %v3242_v11 }
 0x789   :  { %3050 = vmatprep.subr.bf16.mxu1 %v3523_v42 }
 0x852   :  { %v629_v13 = vpop.f32.mrb[8].mxu1 }
 0x853   :  { %v3018_v14 = vpop.f32.mrb[9].mxu1 }
 0x854   :  { %v632_v15 = vpop.f32.mrb[10].mxu1  ;;  %v3244_v14 = vld [vmem:[%s4330_s7 + $0x10] sm:$0xff]  }
 0x855   :  { %v636_v16 = vpack.c.bf16 %v632_v15, %v629_v13  ;;  %v3019_v19 = vpop.f32.mrb[11].mxu1 }
 0x857   :  { %3041 = vmatmul.mubr.msk.bf16.vlgmr.msra.gmra.mrb[16].mxu1 %vm520_vm9, %v636_v16 }
 0x858   :  { %3052 = vmatprep.mubr.msk.bf16.mxu1 %vm3524_vm8, %v3523_v42 }
 0x85a   :  { %v755_v20 = vpop.f32.mrb[12].mxu1 }
 0x85b   :  { %v3030_v21 = vpop.f32.mrb[13].mxu1 }
 0x85c   :  { %v758_v24 = vpop.f32.mrb[14].mxu1 }
 0x85d   :  { %v762_v25 = vpack.c.bf16 %v758_v24, %v755_v20  ;;  %v3031_v26 = vpop.f32.mrb[15].mxu1 }
 0x85f   :  { %3035 = vmatmul.mubr.msk.bf16.vlgmr.msra.gmra.mrb[8].mxu0 %vm520_vm9, %v762_v25 }
 0x860   :  { %3045 = vmatpush3.bf16.xpose.msra.mxu0 %v873_v28  ;;  %3046 = vmatprep.mubr.msk.bf16.mxu0 %vm3524_vm8, %v3523_v42 }
 0x861   :  { %3056 = vmatprep.subr.bf16.mxu0 %v3523_v42 }
 0x867   :  { %3047 = vmatmul.mubr.msk.bf16.vlgmr.msra.gmra.mrb[12].mxu0 %vm520_vm9, %v866_v31 }
 0x868   :  { %3058 = vmatprep.mubr.msk.bf16.mxu0 %vm3524_vm8, %v3523_v42  ;;  %3057 = vmatpush3.bf16.msra.mxu0 %v3244_v14 }
 0x869   :  { %3068 = vmatprep.subr.bf16.mxu0 %v3523_v42 }
 0x92a   :  { %v858_v32 = vpop.f32.mrb[16].mxu1 }
 0x92b   :  { %v3042_v33 = vpop.f32.mrb[17].mxu1 }
 0x92c   :  { %v861_v34 = vpop.f32.mrb[18].mxu1 }
 0x92d   :  { %v3043_v35 = vpop.f32.mrb[19].mxu1 }
 0x932   :  { %v808_v36 = vpop.f32.mrb[8].mxu0 }
 0x933   :  { %v3909_v37 = vadd.f32 %v858_v32, %v808_v36  ;;  %v3036_v38 = vpop.f32.mrb[9].mxu0 }
 0x934   :  { %v811_v41 = vpop.f32.mrb[10].mxu0 }
 0x935   :  { %v3911_v43 = vadd.f32 %v861_v34, %v811_v41  ;;  %v3037_v44 = vpop.f32.mrb[11].mxu0 }
 0x93a   :  { %v909_v45 = vpop.f32.mrb[12].mxu0 }
 0x93b   :  { %v910_v46 = vadd.f32 %v909_v45, %v3858_v7  ;;  %v3048_v47 = vpop.f32.mrb[13].mxu0 }
 0x93c   :  { %v912_v48 = vpop.f32.mrb[14].mxu0 }
 0x93d   :  { %v913_v49 = vadd.f32 %v912_v48, %v3863_v10  ;;  %v3049_v50 = vpop.f32.mrb[15].mxu0  ;;  %v916_v51 = vsel %vm520_vm9, %v910_v46, -inf }
 0x93e   :  { %917 = vmax.xlane.f32.xlu1 %v916_v51 }
 0x93f   :  { %v919_v52 = vsel %vm520_vm9, %v913_v49, -inf }
 0x940   :  { %920 = vmax.xlane.f32.xlu0 %v919_v52 }
 0x9cb   :  { %v918_v54 = vpop.xlane.xlu1 %917 }
 0x9cc   :  { %v922_v55 = vsub.f32 %v910_v46, %v918_v54 }
 0x9cd   :  { %v921_v56 = vpop.xlane.xlu0 %920 }
 0x9ce   :  { %v924_v57 = vmul.f32 1.442695, %v922_v55  ;;  %v923_v58 = vsub.f32 %v913_v49, %v921_v56 }
 0x9d0   :  { %3334 = vpow2.f32 %v924_v57  ;;  %v926_v59 = vmul.f32 1.442695, %v923_v58 }
 0x9d2   :  { %3336 = vpow2.f32 %v926_v59 }
 0x9da   :  { %v3335_v60 = vpop.eup %3334 }
 0x9db   :  { %v928_v62 = vsel %vm520_vm9, %v3335_v60, 0.0 }
 0x9dc   :  { %v3337_v63 = vpop.eup %3336  ;;  %929 = vadd.xlane.f32.xlu0 %v928_v62 }
 0x9dd   :  { %v931_v2 = vsel %vm520_vm9, %v3337_v63, 0.0 }
 0x9de   :  { %932 = vadd.xlane.f32.xlu1 %v931_v2 }
 0x9ef   :  { %1043 = vrot.lane.b32.xlu1 %v3830_v53, %s3529_s13 }
 0x9f2   :  { %939 = vrot.lane.b32.xlu0 %v3744_v61, %s3527_s26 }
 0x9f3   :  { %1041 = vrot.lane.b32.xlu1 %v3838_v1, %s3530_s14 }
 0xa69   :  { %v930_v3 = vpop.xlane.xlu0 %929 }
 0xa6a   :  { %3338 = vrcp.f32 %v930_v3 }
 0xa6b   :  { %v933_v4 = vpop.xlane.xlu1 %932 }
 0xa6c   :  { %3340 = vrcp.f32 %v933_v4 }
 0xa6d   :  { %v940_v5 = vpop.permute.xlu0 %939 }
 0xa6e   :  { %3051 = vmatpush3.bf16.msra.mxu1 %v940_v5 }
 0xa6f   :  { %3062 = vmatprep.subr.bf16.mxu1 %v3523_v42  ;;  %v1044_v53 = vpop.permute.xlu1 %1043 }
 0xa70   :  { %v1049_v13 = vsel %vm520_vm9, %v1044_v53, 0 }
 0xa73   :  { %v1042_v1 = vpop.permute.xlu1 %1041 }
 0xa74   :  { %v3339_v6 = vpop.eup %3338 }
 0xa75   :  { %v936_v9 = vmul.f32 %v3339_v6, %v3335_v60 }
 0xa76   :  { %v3341_v8 = vpop.eup %3340 }
 0xa77   :  { %v937_v11 = vmul.f32 %v3341_v8, %v3337_v63 }
 0xa79   :  { %v938_v12 = vpack.c.bf16 %v937_v11, %v936_v9 }
 0xa7b   :  { %3053 = vmatmul.mubr.msk.bf16.vlgmr.msra.gmra.mrb[20].mxu1 %vm520_vm9, %v938_v12 }
 0xa7c   :  { %3063 = vmatpush3.bf16.xpose.msra.mxu1 %v1049_v13  ;;  %3064 = vmatprep.mubr.msk.bf16.mxu1 %vm3524_vm8, %v3523_v42 }
 0xa7d   :  { %3074 = vmatprep.subr.bf16.mxu1 %v3523_v42 }
 0xa83   :  { %3065 = vmatmul.mubr.msk.bf16.vlgmr.msra.gmra.mrb[24].mxu1 %vm520_vm9, %v1042_v1 }
 0xa84   :  { %3076 = vmatprep.mubr.msk.bf16.mxu1 %vm3524_vm8, %v3523_v42 }
 0xb4e   :  { %v979_v15 = vpop.f32.mrb[20].mxu1 }
 0xb4f   :  { %v3054_v16 = vpop.f32.mrb[21].mxu1 }
 0xb50   :  { %v982_v19 = vpop.f32.mrb[22].mxu1 }
 0xb51   :  { %v986_v20 = vpack.c.bf16 %v982_v19, %v979_v15  ;;  %v3055_v21 = vpop.f32.mrb[23].mxu1 }
 0xb52   :  { %v3249_v21 = vld [vmem:[%s4331_s8 + $0x10] ss:$8 sps:$4 sm:$0xff]  }
 0xb53   :  { %3059 = vmatmul.mubr.msk.bf16.vlgmr.msra.gmra.mrb[16].mxu0 %vm520_vm9, %v986_v20  ;;  %v3251_v20 = vld [vmem:[%s4331_s8 + $0x14] ss:$8 sps:$4 sm:$0xff]  }
 0xb54   :  { %3070 = vmatprep.mubr.msk.bf16.mxu0 %vm3524_vm8, %v3523_v42 }
 0xb56   :  { %v1085_v23 = vpop.f32.mrb[24].mxu1 }
 0xb57   :  { %v1086_v24 = vadd.f32 %v1085_v23, %v3858_v7  ;;  %v3066_v25 = vpop.f32.mrb[25].mxu1  ;;  %v3254_v23 = vld [vmem:[%s4331_s8 + $0x24] ss:$8 sps:$4 sm:$0xff]  }
 0xb58   :  { %v1088_v26 = vpop.f32.mrb[26].mxu1  ;;  %v3255_v25 = vld [vmem:[%s4331_s8 + $0x30] ss:$8 sps:$4 sm:$0xff]  }
 0xb59   :  { %v1089_v28 = vadd.f32 %v1088_v26, %v3863_v10  ;;  %v3067_v31 = vpop.f32.mrb[27].mxu1  ;;  %v1092_v32 = vsel %vm520_vm9, %v1086_v24, -inf  ;;  %v3257_v26 = vld [vmem:[%s4331_s8 + $0x34] ss:$8 sps:$4 sm:$0xff]  }
 0xb5a   :  { %1093 = vmax.xlane.f32.xlu0 %v1092_v32 }
 0xb5b   :  { %v1095_v33 = vsel %vm520_vm9, %v1089_v28, -inf }
 0xb5c   :  { %1096 = vmax.xlane.f32.xlu1 %v1095_v33 }
 0xb6d   :  { %1115 = vrot.lane.b32.xlu1 %v3744_v61, %s3530_s14  ;;  %v3245_v61 = vld [vmem:[%s4330_s7 + $0x18] sm:$0xff]  }
 0xb6e   :  { %3075 = vmatpush3.bf16.msra.mxu1 %v3245_v61  ;;  %v3259_v61 = vld [vmem:[%s4332_s9 + $0x8] sm:$0xff]  }
 0xb6f   :  { %3080 = vmatprep.subr.bf16.mxu1 %v3523_v42 }
 0xbe7   :  { %v1094_v34 = vpop.xlane.xlu0 %1093 }
 0xbe8   :  { %v1098_v35 = vsub.f32 %v1086_v24, %v1094_v34  ;;  %v3252_v24 = vld [vmem:[%s4331_s8 + $0x20] ss:$8 sps:$4 sm:$0xff]  }
 0xbe9   :  { %v1097_v36 = vpop.xlane.xlu1 %1096 }
 0xbea   :  { %v1100_v38 = vmul.f32 1.442695, %v1098_v35  ;;  %v1099_v41 = vsub.f32 %v1089_v28, %v1097_v36 }
 0xbec   :  { %3342 = vpow2.f32 %v1100_v38  ;;  %v1102_v44 = vmul.f32 1.442695, %v1099_v41 }
 0xbed   :  { %v1116_v45 = vpop.permute.xlu1 %1115 }
 0xbee   :  { %3344 = vpow2.f32 %v1102_v44  ;;  %3069 = vmatpush3.bf16.msra.mxu0 %v1116_v45  ;;  %v2804_v44 = vld [vmem:[#allocation5 + $0x1] ss:$0 sm:$0xff] }
 0xbf6   :  { %v3343_v46 = vpop.eup %3342 }
 0xbf7   :  { %v1104_v47 = vsel %vm520_vm9, %v3343_v46, 0.0 }
 0xbf8   :  { %v3345_v48 = vpop.eup %3344  ;;  %1105 = vadd.xlane.f32.xlu0 %v1104_v47 }
 0xbf9   :  { %v1107_v49 = vsel %vm520_vm9, %v3345_v48, 0.0 }
 0xbfc   :  { %1108 = vadd.xlane.f32.xlu0 %v1107_v49  ;;  %v3258_v49 = vld [vmem:[%s4332_s9] sm:$0xff]  }
 0xc26   :  { %v1032_v50 = vpop.f32.mrb[16].mxu0 }
 0xc27   :  { %v1039_v51 = vadd.f32 %v1032_v50, %v3909_v37  ;;  %v3060_v52 = vpop.f32.mrb[17].mxu0  ;;  %v3260_v50 = vld [vmem:[%s4332_s9 + $0x10] sm:$0xff]  }
 0xc28   :  { %v1035_v54 = vpop.f32.mrb[18].mxu0  ;;  %v3262_v52 = vld [vmem:[%s4332_s9 + $0x20] sm:$0xff]  }
 0xc29   :  { %v1040_v55 = vadd.f32 %v1035_v54, %v3911_v43  ;;  %v3061_v56 = vpop.f32.mrb[19].mxu0  ;;  %v3263_v54 = vld [vmem:[%s4332_s9 + $0x28] sm:$0xff]  }
 0xc2a   :  { %v3265_v56 = vld [vmem:[%s4332_s9 + $0x38] sm:$0xff]  }
 0xc85   :  { %v1106_v57 = vpop.xlane.xlu0 %1105 }
 0xc86   :  { %3346 = vrcp.f32 %v1106_v57 }
 0xc89   :  { %v1109_v58 = vpop.xlane.xlu0 %1108 }
 0xc8a   :  { %3348 = vrcp.f32 %v1109_v58 }
 0xc90   :  { %v3347_v59 = vpop.eup %3346 }
 0xc91   :  { %v1112_v62 = vmul.f32 %v3347_v59, %v3343_v46 }
 0xc94   :  { %v3349_v60 = vpop.eup %3348 }
 0xc95   :  { %v1113_v63 = vmul.f32 %v3349_v60, %v3345_v48 }
 0xc97   :  { %v1114_v2 = vpack.c.bf16 %v1113_v63, %v1112_v62 }
 0xc99   :  { %3071 = vmatmul.mubr.msk.bf16.vlgmr.msra.gmra.mrb[20].mxu0 %vm520_vm9, %v1114_v2 }
 0xc9a   :  { %1326 = vmatprep.mubr.bf16.mxu0 %v3517_v0 }
 0xd6c   :  { %v1155_v3 = vpop.f32.mrb[20].mxu0 }
 0xd6d   :  { %v3072_v37 = vpop.f32.mrb[21].mxu0 }
 0xd6e   :  { %v1158_v4 = vpop.f32.mrb[22].mxu0 }
 0xd6f   :  { %v1162_v5 = vpack.c.bf16 %v1158_v4, %v1155_v3  ;;  %v3073_v6 = vpop.f32.mrb[23].mxu0 }
 0xd71   :  { %3077 = vmatmul.mubr.msk.bf16.vlgmr.msra.gmra.mrb[28].mxu1 %vm520_vm9, %v1162_v5 }
 0xd72   :  { %3096 = vmatprep.mubr.msk.bf16.mxu1 %vm3524_vm8, %v3523_v42  ;;  %3081 = vmatpush3.bf16.msra.mxu1 %v3258_v49 }
 0xd73   :  { %3082 = vmatprep.subr.bf16.mxu1 %v3523_v42 }
 0xd76   :  { %3083 = vmatpush3.bf16.msra.mxu1 %v3259_v61 }
 0xd77   :  { %3084 = vmatprep.subr.bf16.mxu1 %v3523_v42 }
 0xd7a   :  { %3085 = vmatpush3.bf16.msra.mxu1 %v3260_v50 }
 0xd7b   :  { %3086 = vmatprep.subr.bf16.mxu1 %v3523_v42 }
 0xe44   :  { %v1208_v43 = vpop.f32.mrb[28].mxu1 }
 0xe45   :  { %v1215_v8 = vadd.f32 %v1208_v43, %v1039_v51  ;;  %v3078_v9 = vpop.f32.mrb[29].mxu1  ;;  %v3261_v51 = vld [vmem:[%s4332_s9 + $0x18] sm:$0xff]  }
 0xe46   :  { %v1211_v11 = vpop.f32.mrb[30].mxu1  ;;  %3087 = vmatpush3.bf16.msra.mxu1 %v3261_v51 }
 0xe47   :  { %v3961_v53 = vadd.f32 %v3699_v27, %v1215_v8  ;;  %v1216_v12 = vadd.f32 %v1211_v11, %v1040_v55  ;;  %v3079_v13 = vpop.f32.mrb[31].mxu1  ;;  %v3248_v27 = vld [vmem:[%s4331_s8 + $0x4] ss:$8 sps:$4 sm:$0xff]   ;;  %3088 = vmatprep.subr.bf16.mxu1 %v3523_v42  ;;  %v3264_v55 = vld [vmem:[%s4332_s9 + $0x30] sm:$0xff]  }
 0xe48   :  { %1294 = vmatprep.subr.bf16.mxu0 %v3248_v27 }
 0xe49   :  { %v3964_v1 = vadd.f32 %v3701_v30, %v1216_v12  ;;  %v1220_v14 = vmul.f32 %v3961_v53, %v3961_v53  ;;  %v3246_v30 = vld [vmem:[%s4331_s8] ss:$8 sps:$4 sm:$0xff]  }
 0xe4a   :  { %1295 = vmatpush1.bf16.msra.mxu0 %v3246_v30  ;;  %3089 = vmatpush3.bf16.msra.mxu1 %v3262_v52 }
 0xe4b   :  { %v1222_v15 = vsel %vm287_vm6, %v1220_v14, 0.0  ;;  %v1221_v16 = vmul.f32 %v3964_v1, %v3964_v1  ;;  %1296 = vmatprep.subr.bf16.mxu0 %v3251_v20  ;;  %3090 = vmatprep.subr.bf16.mxu1 %v3523_v42 }
 0xe4c   :  { %1223 = vadd.xlane.f32.xlu0 %v1222_v15 }
 0xe4d   :  { %v1225_v19 = vsel %vm287_vm6, %v1221_v16, 0.0 }
 0xe4e   :  { %1297 = vmatpush1.bf16.msra.mxu0 %v3249_v21  ;;  %3091 = vmatpush3.bf16.msra.mxu1 %v3263_v54 }
 0xe4f   :  { %1298 = vmatprep.subr.bf16.mxu0 %v3254_v23  ;;  %3092 = vmatprep.subr.bf16.mxu1 %v3523_v42 }
 0xe50   :  { %1226 = vadd.xlane.f32.xlu0 %v1225_v19 }
 0xe52   :  { %1299 = vmatpush1.bf16.msra.mxu0 %v3252_v24  ;;  %3093 = vmatpush3.bf16.msra.mxu1 %v3264_v55  ;;  %v3271_v24 = vld [vmem:[%s4329_s6 + $0x54] ss:$8 sps:$4 sm:$0xff]  }
 0xe53   :  { %1300 = vmatprep.subr.bf16.mxu0 %v3257_v26  ;;  %3094 = vmatprep.subr.bf16.mxu1 %v3523_v42  ;;  %v3274_v26 = vld [vmem:[%s4329_s6 + $0x64] ss:$8 sps:$4 sm:$0xff]  }
 0xe56   :  { %1301 = vmatpush1.bf16.msra.mxu0 %v3255_v25  ;;  %3095 = vmatpush3.bf16.msra.mxu1 %v3265_v56  ;;  %v3269_v25 = vld [vmem:[%s4329_s6 + $0x50] ss:$8 sps:$4 sm:$0xff]  }
 0xe57   :  { %3106 = vmatprep.subr.bf16.mxu1 %v3523_v42 }
 0xed9   :  { %v1224_v28 = vpop.xlane.xlu0 %1223 }
 0xeda   :  { %v1228_v31 = vmul.f32 0.015625, %v1224_v28  ;;  %v3272_v28 = vld [vmem:[%s4329_s6 + $0x60] ss:$8 sps:$4 sm:$0xff]  }
 0xedc   :  { %v1230_v32 = vadd.f32 1e-05, %v1228_v31  ;;  %v3275_v31 = vld [vmem:[%s4329_s6 + $0x70] ss:$8 sps:$4 sm:$0xff]  }
 0xedd   :  { %v1227_v33 = vpop.xlane.xlu0 %1226 }
 0xede   :  { %3350 = vrsqrt.f32 %v1230_v32  ;;  %v1229_v34 = vmul.f32 0.015625, %v1227_v33  ;;  %v3277_v32 = vld [vmem:[%s4329_s6 + $0x74] ss:$8 sps:$4 sm:$0xff]  }
 0xee0   :  { %v1231_v35 = vadd.f32 1e-05, %v1229_v34 }
 0xee2   :  { %3352 = vrsqrt.f32 %v1231_v35 }
 0xee8   :  { %v3351_v36 = vpop.eup %3350 }
 0xee9   :  { %v1234_v38 = vmul.f32 %v3351_v36, %v3961_v53 }
 0xeeb   :  { %v1240_v46 = vmul.f32 %v2804_v44, %v1234_v38 }
 0xeec   :  { %v3353_v41 = vpop.eup %3352 }
 0xeed   :  { %v1235_v45 = vmul.f32 %v3353_v41, %v3964_v1 }
 0xeef   :  { %v1241_v47 = vmul.f32 %v2804_v44, %v1235_v45 }
 0xef1   :  { %v1242_v48 = vpack.c.bf16 %v1241_v47, %v1240_v46  ;;  %v2824_v47 = vld [vmem:[#allocation5 + $0x2] ss:$0 sm:$0xff] }
 0xef3   :  { %2813 = vmatmul.mubr.msk.bf16.vlgmr.msra.gmra.mrb[24].mxu0 %vm287_vm6, %v1242_v48 }
 0xef4   :  { %1569 = vmatprep.mubr.bf16.mxu0 %v3517_v0 }
 0xfc6   :  { %v1328_v57 = vpop.f32.mrb[24].mxu0 }
 0xfc7   :  { %v2814_v58 = vmul.f32 -1.442695, %v1328_v57  ;;  %v1330_v59 = vpop.f32.mrb[25].mxu0 }
 0xfc8   :  { %v1332_v60 = vpop.f32.mrb[26].mxu0 }
 0xfc9   :  { %3354 = vpow2.f32 %v2814_v58  ;;  %v2815_v62 = vmul.f32 -1.442695, %v1332_v60  ;;  %v1334_v63 = vpop.f32.mrb[27].mxu0 }
 0xfcb   :  { %3356 = vpow2.f32 %v2815_v62 }
 0xfd3   :  { %v3355_v2 = vpop.eup %3354 }
 0xfd4   :  { %v1343_v3 = vadd.f32 1.0, %v3355_v2 }
 0xfd5   :  { %v3357_v37 = vpop.eup %3356 }
 0xfd6   :  { %3358 = vrcp.f32 %v1343_v3  ;;  %v1344_v4 = vadd.f32 1.0, %v3357_v37 }
 0xfd8   :  { %3360 = vrcp.f32 %v1344_v4 }
 0xfe0   :  { %v3359_v5 = vpop.eup %3358 }
 0xfe1   :  { %v1349_v6 = vmul.f32 %v3359_v5, %v1328_v57 }
 0xfe2   :  { %v3361_v43 = vpop.eup %3360 }
 0xfe3   :  { %v1351_v8 = vmul.f32 %v1349_v6, %v1330_v59  ;;  %v1350_v9 = vmul.f32 %v3361_v43, %v1332_v60 }
 0xfe5   :  { %v1352_v11 = vmul.f32 %v1350_v9, %v1334_v63 }
 0xfe7   :  { %v1353_v12 = vpack.c.bf16 %v1352_v11, %v1351_v8 }
 0xfe9   :  { %3097 = vmatmul.mubr.bf16.vlgmr.msra.gmra.mrb[32].mxu1 %v1353_v12 }
 0xfea   :  { %3108 = vmatprep.mubr.msk.bf16.mxu1 %vm3524_vm8, %v3523_v42 }
0x10bc   :  { %v1452_v13 = vpop.f32.mrb[32].mxu1 }
0x10bd   :  { %v4035_v14 = vadd.f32 %v1452_v13, %v3961_v53  ;;  %v3098_v15 = vpop.f32.mrb[33].mxu1  ;;  %v3268_v53 = vld [vmem:[%s4329_s6 + $0x44] ss:$8 sps:$4 sm:$0xff]  }
0x10be   :  { %v1455_v16 = vpop.f32.mrb[34].mxu1  ;;  %1537 = vmatprep.subr.bf16.mxu0 %v3268_v53 }
0x10bf   :  { %v4038_v19 = vadd.f32 %v1455_v16, %v3964_v1  ;;  %v3099_v27 = vpop.f32.mrb[35].mxu1  ;;  %v1462_v30 = vmul.f32 %v4035_v14, %v4035_v14  ;;  %v3266_v1 = vld [vmem:[%s4329_s6 + $0x40] ss:$8 sps:$4 sm:$0xff]  }
0x10c0   :  { %1538 = vmatpush1.bf16.msra.mxu0 %v3266_v1 }
0x10c1   :  { %v1464_v20 = vsel %vm287_vm6, %v1462_v30, 0.0  ;;  %v1463_v21 = vmul.f32 %v4038_v19, %v4038_v19  ;;  %1539 = vmatprep.subr.bf16.mxu0 %v3271_v24 }
0x10c2   :  { %1465 = vadd.xlane.f32.xlu0 %v1464_v20 }
0x10c3   :  { %v1467_v23 = vsel %vm287_vm6, %v1463_v21, 0.0 }
0x10c4   :  { %1540 = vmatpush1.bf16.msra.mxu0 %v3269_v25 }
0x10c5   :  { %1541 = vmatprep.subr.bf16.mxu0 %v3274_v26 }
0x10c6   :  { %1468 = vadd.xlane.f32.xlu0 %v1467_v23 }
0x10c8   :  { %1542 = vmatpush1.bf16.msra.mxu0 %v3272_v28 }
0x10c9   :  { %1543 = vmatprep.subr.bf16.mxu0 %v3277_v32 }
0x10cc   :  { %1544 = vmatpush1.bf16.msra.mxu0 %v3275_v31 }
0x10cd   :  { %3100 = vmatprep.subr.bf16.mxu0 %v3523_v42 }
0x114f   :  { %v1466_v33 = vpop.xlane.xlu0 %1465 }
0x1150   :  { %v1470_v34 = vmul.f32 0.015625, %v1466_v33 }
0x1152   :  { %v1472_v35 = vadd.f32 1e-05, %v1470_v34 }
0x1153   :  { %v1469_v36 = vpop.xlane.xlu0 %1468 }
0x1154   :  { %3362 = vrsqrt.f32 %v1472_v35  ;;  %v1471_v38 = vmul.f32 0.015625, %v1469_v36 }
0x1156   :  { %v1473_v41 = vadd.f32 1e-05, %v1471_v38 }
0x1158   :  { %3364 = vrsqrt.f32 %v1473_v41  ;;  %v3414_v41 = vld [vmem:[#allocation2] sm:$0xff] }
0x115e   :  { %v3363_v44 = vpop.eup %3362 }
0x115f   :  { %v1476_v45 = vmul.f32 %v3363_v44, %v4035_v14  ;;  %v3415_v44 = vld [vmem:[#allocation2 + $0x8] sm:$0xff] }
0x1161   :  { %v1482_v49 = vmul.f32 %v2824_v47, %v1476_v45 }
0x1162   :  { %v3365_v46 = vpop.eup %3364 }
0x1163   :  { %v1477_v48 = vmul.f32 %v3365_v46, %v4038_v19 }
0x1165   :  { %v1483_v61 = vmul.f32 %v2824_v47, %v1477_v48 }
0x1167   :  { %v1484_v50 = vpack.c.bf16 %v1483_v61, %v1482_v49 }
0x1169   :  { %2841 = vmatmul.mubr.msk.bf16.vlgmr.msra.gmra.mrb[28].mxu0 %vm287_vm6, %v1484_v50 }
0x116a   :  { %3102 = vmatprep.mubr.msk.bf16.mxu0 %vm3524_vm8, %v3523_v42 }
0x123c   :  { %v1571_v51 = vpop.f32.mrb[28].mxu0 }
0x123d   :  { %1624 = vrot.lane.b32.xlu1 %v1571_v51, %s3519_s30  ;;  %v1573_v52 = vpop.f32.mrb[29].mxu0  ;;  %v1580_v59 = vmul.f32 0.25, %v1571_v51  ;;  %v1620_v28 = vmul.f32 %v1571_v51, %v3816_v39 }
0x123e   :  { %v1575_v54 = vpop.f32.mrb[30].mxu0 }
0x123f   :  { %1626 = vrot.lane.b32.xlu0 %v1575_v54, %s3519_s30  ;;  %v1577_v55 = vpop.f32.mrb[31].mxu0  ;;  %v1581_v60 = vmul.f32 0.25, %v1575_v54  ;;  %v1621_v31 = vmul.f32 %v1575_v54, %v3818_v40 }
0x1240   :  { %v4078_v56 = vpack.c.bf16 %v1577_v55, %v1573_v52 }
0x1241   :  { %v1583_v45 = vmul.f32 %v3415_v44, %v1581_v60 }
0x1242   :  { %3107 = vmatpush3.bf16.msra.mxu1 %v4078_v56 }
0x1243   :  { %3118 = vmatprep.subr.bf16.mxu1 %v3523_v42 }
0x12af   :  { %v1625_v57 = vpop.permute.xlu1 %1624 }
0x12b0   :  { %1630 = vrot.lane.b32.xlu1 %v1625_v57, %s3519_s30 }
0x12b1   :  { %v1627_v58 = vpop.permute.xlu0 %1626 }
0x12b4   :  { %1633 = vrot.lane.b32.xlu1 %v1627_v58, %s3519_s30 }
0x12b8   :  { %1584 = vrot.lane.b32.xlu1 %v1580_v59, %s3519_s30 }
0x12bc   :  { %1587 = vrot.lane.b32.xlu1 %v1581_v60, %s3519_s30 }
0x1322   :  { %v1631_v62 = vpop.permute.xlu1 %1630 }
0x1323   :  { %v1632_v63 = vsel %vm408_vm7, %v1631_v62, %v1625_v57 }
0x1324   :  { %1636 = vrot.lane.b32.xlu1 %v1632_v63, %s3519_s30 }
0x1326   :  { %v1634_v2 = vpop.permute.xlu1 %1633 }
0x1327   :  { %v1635_v3 = vsel %vm408_vm7, %v1634_v2, %v1627_v58 }
0x1328   :  { %1638 = vrot.lane.b32.xlu0 %v1635_v3, %s3519_s30 }
0x132a   :  { %v1585_v37 = vpop.permute.xlu1 %1584 }
0x132b   :  { %v1586_v4 = vsel %vm408_vm7, %v1585_v37, %v1580_v59 }
0x132c   :  { %1590 = vrot.lane.b32.xlu1 %v1586_v4, %s3519_s30 }
0x132e   :  { %v1588_v5 = vpop.permute.xlu1 %1587 }
0x132f   :  { %v1589_v6 = vsel %vm408_vm7, %v1588_v5, %v1581_v60 }
0x1330   :  { %1592 = vrot.lane.b32.xlu0 %v1589_v6, %s3519_s30 }
0x1396   :  { %v1637_v43 = vpop.permute.xlu1 %1636 }
0x1397   :  { %v1640_v8 = vsel %vm408_vm7, %v1637_v43, %v1625_v57 }
0x1398   :  { %v1642_v9 = vmul.f32 %v1640_v8, %v3786_v17  ;;  %v1654_v15 = vmul.f32 %v1640_v8, %v3792_v22 }
0x139a   :  { %v1639_v11 = vpop.permute.xlu0 %1638  ;;  %1646 = vrot.lane.b32.xlu1 %v1642_v9, %s3520_s17 }
0x139b   :  { %v1641_v12 = vsel %vm408_vm7, %v1639_v11, %v1627_v58 }
0x139c   :  { %v1643_v13 = vmul.f32 %v1641_v12, %v3788_v18  ;;  %v1655_v20 = vmul.f32 %v1641_v12, %v3800_v29 }
0x139e   :  { %1648 = vrot.lane.b32.xlu0 %v1643_v13, %s3520_s17  ;;  %1658 = vrot.lane.b32.xlu1 %v1654_v15, %s3515_s22  ;;  %v1591_v16 = vpop.permute.xlu1 %1590 }
0x139f   :  { %v1594_v27 = vsel %vm408_vm7, %v1591_v16, %v1580_v59 }
0x13a0   :  { %v1596_v30 = vmul.f32 %v1594_v27, %v3786_v17  ;;  %v1608_v53 = vmul.f32 %v1594_v27, %v3792_v22 }
0x13a2   :  { %1660 = vrot.lane.b32.xlu0 %v1655_v20, %s3515_s22  ;;  %v1593_v21 = vpop.permute.xlu0 %1592  ;;  %1600 = vrot.lane.b32.xlu1 %v1596_v30, %s3521_s3 }
0x13a3   :  { %v1595_v23 = vsel %vm408_vm7, %v1593_v21, %v1581_v60 }
0x13a4   :  { %v1597_v1 = vmul.f32 %v1595_v23, %v3788_v18  ;;  %v1609_v24 = vmul.f32 %v1595_v23, %v3800_v29  ;;  %v1582_v29 = vmul.f32 %v3414_v41, %v1580_v59 }
0x13a6   :  { %1602 = vrot.lane.b32.xlu0 %v1597_v1, %s3521_s3  ;;  %1612 = vrot.lane.b32.xlu1 %v1608_v53, %s3522_s19 }
0x13aa   :  { %1614 = vrot.lane.b32.xlu0 %v1609_v24, %s3522_s19 }
0x140c   :  { %v1647_v17 = vpop.permute.xlu1 %1646 }
0x140d   :  { %v1652_v32 = vadd.f32 %v1647_v17, %v1620_v28 }
0x1410   :  { %v1649_v25 = vpop.permute.xlu0 %1648  ;;  %v1659_v26 = vpop.permute.xlu1 %1658 }
0x1411   :  { %v1653_v33 = vadd.f32 %v1649_v25, %v1621_v31  ;;  %v1664_v18 = vadd.f32 %v1659_v26, %v1652_v32 }
0x1414   :  { %v1661_v22 = vpop.permute.xlu0 %1660  ;;  %v1601_v34 = vpop.permute.xlu1 %1600 }
0x1415   :  { %v1665_v35 = vadd.f32 %v1661_v22, %v1653_v33  ;;  %v1606_v40 = vadd.f32 %v1601_v34, %v1582_v29 }
0x1417   :  { %v4116_v36 = vpack.c.bf16 %v1665_v35, %v1664_v18 }
0x1418   :  { %v1603_v38 = vpop.permute.xlu0 %1602  ;;  %v1613_v39 = vpop.permute.xlu1 %1612 }
0x1419   :  { %1793 = vrot.lane.b32.xlu0 %v4116_v36, %s3525_s20  ;;  %1669 = vrot.lane.b32.xlu1 %v4116_v36, %s3519_s30  ;;  %v1607_v46 = vadd.f32 %v1603_v38, %v1583_v45  ;;  %v1618_v48 = vadd.f32 %v1613_v39, %v1606_v40 }
0x141c   :  { %v1615_v47 = vpop.permute.xlu0 %1614 }
0x141d   :  { %v1619_v49 = vadd.f32 %v1615_v47, %v1607_v46 }
0x141f   :  { %v4122_v61 = vpack.c.bf16 %v1619_v49, %v1618_v48  ;;  %v3278_v49 = vld [vmem:[%s4330_s7 + $0x20] sm:$0xff]  }
0x1421   :  { %1791 = vrot.lane.b32.xlu1 %v4122_v61, %s3526_s1 }
0x148b   :  { %v1670_v50 = vpop.permute.xlu1 %1669  ;;  %v1794_v52 = vpop.permute.xlu0 %1793 }
0x148c   :  { %v1675_v51 = vsel %vm520_vm9, %v1670_v50, 0  ;;  %v1799_v54 = vsel %vm520_vm9, %v1794_v52, 0  ;;  %v3279_v50 = vld [vmem:[%s4330_s7 + $0x28] sm:$0xff]  }
0x148d   :  { %3101 = vmatpush3.bf16.xpose.msra.mxu0 %v1675_v51 }
0x148e   :  { %3112 = vmatprep.subr.bf16.mxu0 %v3523_v42 }
0x1493   :  { %v1792_v55 = vpop.permute.xlu1 %1791 }
0x1494   :  { %3103 = vmatmul.mubr.msk.bf16.vlgmr.msra.gmra.mrb[32].mxu0 %vm520_vm9, %v4122_v61 }
0x1495   :  { %3113 = vmatpush3.bf16.xpose.msra.mxu0 %v1799_v54  ;;  %3114 = vmatprep.mubr.msk.bf16.mxu0 %vm3524_vm8, %v3523_v42 }
0x1496   :  { %3124 = vmatprep.subr.bf16.mxu0 %v3523_v42 }
0x149c   :  { %3115 = vmatmul.mubr.msk.bf16.vlgmr.msra.gmra.mrb[36].mxu0 %vm520_vm9, %v1792_v55 }
0x149d   :  { %3126 = vmatprep.mubr.msk.bf16.mxu0 %vm3524_vm8, %v3523_v42  ;;  %3125 = vmatpush3.bf16.msra.mxu0 %v3279_v50 }
0x149e   :  { %3136 = vmatprep.subr.bf16.mxu0 %v3523_v42 }
0x1567   :  { %v1711_v57 = vpop.f32.mrb[32].mxu0 }
0x1568   :  { %v1712_v58 = vadd.f32 %v1711_v57, %v3858_v7  ;;  %v3104_v59 = vpop.f32.mrb[33].mxu0 }
0x1569   :  { %v1714_v60 = vpop.f32.mrb[34].mxu0 }
0x156a   :  { %v1715_v62 = vadd.f32 %v1714_v60, %v3863_v10  ;;  %v3105_v63 = vpop.f32.mrb[35].mxu0  ;;  %v1718_v2 = vsel %vm520_vm9, %v1712_v58, -inf }
0x156b   :  { %1719 = vmax.xlane.f32.xlu0 %v1718_v2 }
0x156c   :  { %v1721_v3 = vsel %vm520_vm9, %v1715_v62, -inf }
0x156d   :  { %1722 = vmax.xlane.f32.xlu1 %v1721_v3 }
0x156f   :  { %v1835_v37 = vpop.f32.mrb[36].mxu0 }
0x1570   :  { %v1836_v4 = vadd.f32 %v1835_v37, %v3858_v7  ;;  %v3116_v5 = vpop.f32.mrb[37].mxu0 }
0x1571   :  { %v1838_v6 = vpop.f32.mrb[38].mxu0 }
0x1572   :  { %v1839_v43 = vadd.f32 %v1838_v6, %v3863_v10  ;;  %v3117_v8 = vpop.f32.mrb[39].mxu0  ;;  %v1842_v9 = vsel %vm520_vm9, %v1836_v4, -inf }
0x1573   :  { %1843 = vmax.xlane.f32.xlu0 %v1842_v9 }
0x1574   :  { %v1845_v11 = vsel %vm520_vm9, %v1839_v43, -inf }
0x1577   :  { %1846 = vmax.xlane.f32.xlu0 %v1845_v11 }
0x15f8   :  { %v1720_v12 = vpop.xlane.xlu0 %1719 }
0x15f9   :  { %v1724_v13 = vsub.f32 %v1712_v58, %v1720_v12 }
0x15fa   :  { %v1723_v15 = vpop.xlane.xlu1 %1722 }
0x15fb   :  { %v1726_v16 = vmul.f32 1.442695, %v1724_v13  ;;  %v1725_v27 = vsub.f32 %v1715_v62, %v1723_v15 }
0x15fd   :  { %3366 = vpow2.f32 %v1726_v16  ;;  %v1728_v30 = vmul.f32 1.442695, %v1725_v27  ;;  %v3416_v27 = vld [vmem:[%s4327_s4] sm:$0xff] }
0x15ff   :  { %3368 = vpow2.f32 %v1728_v30 }
0x1600   :  { %v1844_v7 = vpop.xlane.xlu0 %1843 }
0x1601   :  { %v1848_v20 = vsub.f32 %v1836_v4, %v1844_v7 }
0x1603   :  { %v1850_v21 = vmul.f32 1.442695, %v1848_v20 }
0x1604   :  { %v1847_v23 = vpop.xlane.xlu0 %1846 }
0x1605   :  { %3370 = vpow2.f32 %v1850_v21  ;;  %v1849_v10 = vsub.f32 %v1839_v43, %v1847_v23  ;;  %v3417_v21 = vld [vmem:[%s4327_s4 + $0x8] sm:$0xff] }
0x1607   :  { %v3367_v53 = vpop.eup %3366  ;;  %v1852_v1 = vmul.f32 1.442695, %v1849_v10 }
0x1608   :  { %v1730_v24 = vsel %vm520_vm9, %v3367_v53, 0.0 }
0x1609   :  { %v3369_v17 = vpop.eup %3368  ;;  %3372 = vpow2.f32 %v1852_v1  ;;  %1731 = vadd.xlane.f32.xlu1 %v1730_v24 }
0x160a   :  { %v1733_v25 = vsel %vm520_vm9, %v3369_v17, 0.0 }
0x160b   :  { %1734 = vadd.xlane.f32.xlu0 %v1733_v25 }
0x160f   :  { %v3371_v26 = vpop.eup %3370 }
0x1610   :  { %v1854_v28 = vsel %vm520_vm9, %v3371_v26, 0.0 }
0x1611   :  { %1855 = vadd.xlane.f32.xlu1 %v1854_v28 }
0x1613   :  { %v3373_v31 = vpop.eup %3372 }
0x1614   :  { %v1857_v32 = vsel %vm520_vm9, %v3373_v31, 0.0 }
0x1615   :  { %1858 = vadd.xlane.f32.xlu0 %v1857_v32 }
0x1622   :  { %1866 = vrot.lane.b32.xlu1 %v4078_v56, %s3526_s1 }
0x1626   :  { %2016 = vrot.lane.b32.xlu1 %v4122_v61, %s3527_s26 }
0x162b   :  { %2018 = vrot.lane.b32.xlu0 %v4116_v36, %s3528_s27 }
0x1696   :  { %v1732_v33 = vpop.xlane.xlu1 %1731 }
0x1697   :  { %3374 = vrcp.f32 %v1732_v33 }
0x1698   :  { %v1735_v22 = vpop.xlane.xlu0 %1734 }
0x1699   :  { %3376 = vrcp.f32 %v1735_v22 }
0x169e   :  { %v1856_v34 = vpop.xlane.xlu1 %1855 }
0x169f   :  { %3378 = vrcp.f32 %v1856_v34 }
0x16a1   :  { %v3375_v18 = vpop.eup %3374 }
0x16a2   :  { %v1859_v35 = vpop.xlane.xlu0 %1858  ;;  %v1738_v41 = vmul.f32 %v3375_v18, %v3367_v53  ;;  %v1867_v45 = vpop.permute.xlu1 %1866 }
0x16a3   :  { %v3377_v38 = vpop.eup %3376  ;;  %3380 = vrcp.f32 %v1859_v35 }
0x16a4   :  { %v1739_v29 = vmul.f32 %v3377_v38, %v3369_v17 }
0x16a6   :  { %v1740_v44 = vpack.c.bf16 %v1739_v29, %v1738_v41  ;;  %v2019_v60 = vpop.permute.xlu0 %2018  ;;  %v2017_v37 = vpop.permute.xlu1 %2016 }
0x16a7   :  { %v2024_v3 = vsel %vm520_vm9, %v2019_v60, 0 }
0x16a8   :  { %3109 = vmatmul.mubr.msk.bf16.vlgmr.msra.gmra.mrb[36].mxu1 %vm520_vm9, %v1740_v44 }
0x16a9   :  { %3119 = vmatpush3.bf16.msra.mxu1 %v1867_v45  ;;  %3120 = vmatprep.mubr.msk.bf16.mxu1 %vm3524_vm8, %v3523_v42  ;;  %v3379_v39 = vpop.eup %3378 }
0x16aa   :  { %3130 = vmatprep.subr.bf16.mxu1 %v3523_v42  ;;  %v1862_v46 = vmul.f32 %v3379_v39, %v3371_v26 }
0x16ad   :  { %v3381_v40 = vpop.eup %3380 }
0x16ae   :  { %v1863_v47 = vmul.f32 %v3381_v40, %v3373_v31 }
0x16b0   :  { %v1864_v48 = vpack.c.bf16 %v1863_v47, %v1862_v46  ;;  %v3280_v46 = vld [vmem:[%s4330_s7 + $0x30] sm:$0xff]  }
0x16b2   :  { %3121 = vmatmul.mubr.msk.bf16.vlgmr.msra.gmra.mrb[40].mxu1 %vm520_vm9, %v1864_v48 }
0x16b3   :  { %3132 = vmatprep.mubr.msk.bf16.mxu1 %vm3524_vm8, %v3523_v42  ;;  %3131 = vmatpush3.bf16.msra.mxu1 %v3278_v49 }
0x16b4   :  { %3142 = vmatprep.subr.bf16.mxu1 %v3523_v42 }
0x177b   :  { %v1779_v51 = vpop.f32.mrb[36].mxu1 }
0x177c   :  { %v3110_v52 = vpop.f32.mrb[37].mxu1 }
0x177d   :  { %v1782_v54 = vpop.f32.mrb[38].mxu1 }
0x177e   :  { %v1786_v55 = vpack.c.bf16 %v1782_v54, %v1779_v51  ;;  %v3111_v57 = vpop.f32.mrb[39].mxu1 }
0x1780   :  { %3133 = vmatmul.mubr.msk.bf16.vlgmr.msra.gmra.mrb[44].mxu1 %vm520_vm9, %v1786_v55 }
0x1781   :  { %3144 = vmatprep.mubr.msk.bf16.mxu1 %vm3524_vm8, %v3523_v42 }
0x1785   :  { %v1906_v58 = vpop.f32.mrb[40].mxu1 }
0x1786   :  { %v3122_v59 = vpop.f32.mrb[41].mxu1 }
0x1787   :  { %v1909_v62 = vpop.f32.mrb[42].mxu1 }
0x1788   :  { %v1913_v63 = vpack.c.bf16 %v1909_v62, %v1906_v58  ;;  %v3123_v2 = vpop.f32.mrb[43].mxu1 }
0x178a   :  { %3127 = vmatmul.mubr.msk.bf16.vlgmr.msra.gmra.mrb[40].mxu0 %vm520_vm9, %v1913_v63 }
0x178b   :  { %3137 = vmatpush3.bf16.xpose.msra.mxu0 %v2024_v3  ;;  %3138 = vmatprep.mubr.msk.bf16.mxu0 %vm3524_vm8, %v3523_v42 }
0x178c   :  { %3148 = vmatprep.subr.bf16.mxu0 %v3523_v42 }
0x1792   :  { %3139 = vmatmul.mubr.msk.bf16.vlgmr.msra.gmra.mrb[44].mxu0 %vm520_vm9, %v2017_v37 }
0x1793   :  { %3150 = vmatprep.mubr.msk.bf16.mxu0 %vm3524_vm8, %v3523_v42  ;;  %3149 = vmatpush3.bf16.msra.mxu0 %v3280_v46  ;;  %v3291_v46 = vld [vmem:[%s4331_s8 + $0x70] ss:$8 sps:$4 sm:$0xff]  }
0x1794   :  { %3160 = vmatprep.subr.bf16.mxu0 %v3523_v42 }
0x1853   :  { %v2009_v4 = vpop.f32.mrb[44].mxu1 }
0x1854   :  { %v3134_v5 = vpop.f32.mrb[45].mxu1 }
0x1855   :  { %v2012_v6 = vpop.f32.mrb[46].mxu1 }
0x1856   :  { %v3135_v43 = vpop.f32.mrb[47].mxu1 }
0x185d   :  { %v1959_v8 = vpop.f32.mrb[40].mxu0 }
0x185e   :  { %v4181_v9 = vadd.f32 %v2009_v4, %v1959_v8  ;;  %v3128_v11 = vpop.f32.mrb[41].mxu0 }
0x185f   :  { %v1962_v12 = vpop.f32.mrb[42].mxu0 }
0x1860   :  { %v4183_v13 = vadd.f32 %v2012_v6, %v1962_v12  ;;  %v3129_v15 = vpop.f32.mrb[43].mxu0 }
0x1865   :  { %v2060_v16 = vpop.f32.mrb[44].mxu0 }
0x1866   :  { %v2061_v30 = vadd.f32 %v3416_v27, %v2060_v16  ;;  %v3140_v7 = vpop.f32.mrb[45].mxu0 }
0x1867   :  { %v2063_v20 = vpop.f32.mrb[46].mxu0 }
0x1868   :  { %v2064_v23 = vadd.f32 %v3417_v21, %v2063_v20  ;;  %v3141_v10 = vpop.f32.mrb[47].mxu0  ;;  %v2067_v53 = vsel %vm520_vm9, %v2061_v30, -inf }
0x1869   :  { %2068 = vmax.xlane.f32.xlu1 %v2067_v53 }
0x186a   :  { %v2070_v1 = vsel %vm520_vm9, %v2064_v23, -inf }
0x186b   :  { %2071 = vmax.xlane.f32.xlu0 %v2070_v1 }
0x18f6   :  { %v2069_v24 = vpop.xlane.xlu1 %2068 }
0x18f7   :  { %v2073_v17 = vsub.f32 %v2061_v30, %v2069_v24 }
0x18f8   :  { %v2072_v25 = vpop.xlane.xlu0 %2071 }
0x18f9   :  { %v2075_v26 = vmul.f32 1.442695, %v2073_v17  ;;  %v2074_v28 = vsub.f32 %v2064_v23, %v2072_v25 }
0x18fb   :  { %3382 = vpow2.f32 %v2075_v26  ;;  %v2077_v31 = vmul.f32 1.442695, %v2074_v28 }
0x18fd   :  { %3384 = vpow2.f32 %v2077_v31 }
0x1905   :  { %v3383_v32 = vpop.eup %3382 }
0x1906   :  { %v2079_v33 = vsel %vm520_vm9, %v3383_v32, 0.0 }
0x1907   :  { %v3385_v22 = vpop.eup %3384  ;;  %2080 = vadd.xlane.f32.xlu0 %v2079_v33 }
0x1908   :  { %v2082_v34 = vsel %vm520_vm9, %v3385_v22, 0.0 }
0x1909   :  { %2083 = vadd.xlane.f32.xlu1 %v2082_v34 }
0x191a   :  { %2194 = vrot.lane.b32.xlu1 %v4116_v36, %s3529_s13 }
0x191d   :  { %2090 = vrot.lane.b32.xlu0 %v4078_v56, %s3527_s26 }
0x191e   :  { %2192 = vrot.lane.b32.xlu1 %v4122_v61, %s3530_s14 }
0x1994   :  { %v2081_v18 = vpop.xlane.xlu0 %2080 }
0x1995   :  { %3386 = vrcp.f32 %v2081_v18 }
0x1996   :  { %v2084_v35 = vpop.xlane.xlu1 %2083 }
0x1997   :  { %3388 = vrcp.f32 %v2084_v35 }
0x1998   :  { %v2091_v38 = vpop.permute.xlu0 %2090 }
0x1999   :  { %3143 = vmatpush3.bf16.msra.mxu1 %v2091_v38 }
0x199a   :  { %3154 = vmatprep.subr.bf16.mxu1 %v3523_v42  ;;  %v2195_v39 = vpop.permute.xlu1 %2194 }
0x199b   :  { %v2200_v40 = vsel %vm520_vm9, %v2195_v39, 0  ;;  %v3287_v39 = vld [vmem:[%s4331_s8 + $0x54] ss:$8 sps:$4 sm:$0xff]  }
0x199e   :  { %v2193_v61 = vpop.permute.xlu1 %2192 }
0x199f   :  { %v3387_v41 = vpop.eup %3386 }
0x19a0   :  { %v2087_v44 = vmul.f32 %v3387_v41, %v3383_v32 }
0x19a1   :  { %v3389_v29 = vpop.eup %3388 }
0x19a2   :  { %v2088_v45 = vmul.f32 %v3389_v29, %v3385_v22 }
0x19a4   :  { %v2089_v36 = vpack.c.bf16 %v2088_v45, %v2087_v44 }
0x19a6   :  { %3145 = vmatmul.mubr.msk.bf16.vlgmr.msra.gmra.mrb[48].mxu1 %vm520_vm9, %v2089_v36  ;;  %v3285_v36 = vld [vmem:[%s4331_s8 + $0x50] ss:$8 sps:$4 sm:$0xff]  }
0x19a7   :  { %3155 = vmatpush3.bf16.xpose.msra.mxu1 %v2200_v40  ;;  %3156 = vmatprep.mubr.msk.bf16.mxu1 %vm3524_vm8, %v3523_v42  ;;  %v3290_v40 = vld [vmem:[%s4331_s8 + $0x64] ss:$8 sps:$4 sm:$0xff]  }
0x19a8   :  { %3166 = vmatprep.subr.bf16.mxu1 %v3523_v42 }
0x19ae   :  { %3157 = vmatmul.mubr.msk.bf16.vlgmr.msra.gmra.mrb[52].mxu1 %vm520_vm9, %v2193_v61  ;;  %v3288_v61 = vld [vmem:[%s4331_s8 + $0x60] ss:$8 sps:$4 sm:$0xff]  }
0x19af   :  { %3168 = vmatprep.mubr.msk.bf16.mxu1 %vm3524_vm8, %v3523_v42 }
0x1a79   :  { %v2130_v47 = vpop.f32.mrb[48].mxu1 }
0x1a7a   :  { %v3146_v48 = vpop.f32.mrb[49].mxu1 }
0x1a7b   :  { %v2133_v49 = vpop.f32.mrb[50].mxu1 }
0x1a7c   :  { %v2137_v50 = vpack.c.bf16 %v2133_v49, %v2130_v47  ;;  %v3147_v51 = vpop.f32.mrb[51].mxu1  ;;  %v3293_v47 = vld [vmem:[%s4331_s8 + $0x74] ss:$8 sps:$4 sm:$0xff]  }
0x1a7e   :  { %3151 = vmatmul.mubr.msk.bf16.vlgmr.msra.gmra.mrb[48].mxu0 %vm520_vm9, %v2137_v50 }
0x1a7f   :  { %3162 = vmatprep.mubr.msk.bf16.mxu0 %vm3524_vm8, %v3523_v42 }
0x1a81   :  { %v2236_v52 = vpop.f32.mrb[52].mxu1 }
0x1a82   :  { %v2237_v54 = vadd.f32 %v3416_v27, %v2236_v52  ;;  %v3158_v55 = vpop.f32.mrb[53].mxu1 }
0x1a83   :  { %v2239_v57 = vpop.f32.mrb[54].mxu1 }
0x1a84   :  { %v2240_v58 = vadd.f32 %v3417_v21, %v2239_v57  ;;  %v3159_v59 = vpop.f32.mrb[55].mxu1  ;;  %v2243_v60 = vsel %vm520_vm9, %v2237_v54, -inf }
0x1a85   :  { %2244 = vmax.xlane.f32.xlu0 %v2243_v60  ;;  %v2866_v59 = vld [vmem:[#allocation5 + $0x3] ss:$0 sm:$0xff] }
0x1a86   :  { %v2246_v62 = vsel %vm520_vm9, %v2240_v58, -inf }
0x1a87   :  { %2247 = vmax.xlane.f32.xlu1 %v2246_v62 }
0x1a98   :  { %2266 = vrot.lane.b32.xlu1 %v4078_v56, %s3530_s14  ;;  %v3281_v56 = vld [vmem:[%s4330_s7 + $0x38] sm:$0xff]  }
0x1a99   :  { %3167 = vmatpush3.bf16.msra.mxu1 %v3281_v56 }
0x1a9a   :  { %3172 = vmatprep.subr.bf16.mxu1 %v3523_v42 }
0x1b12   :  { %v2245_v63 = vpop.xlane.xlu0 %2244 }
0x1b13   :  { %v2249_v2 = vsub.f32 %v2237_v54, %v2245_v63 }
0x1b14   :  { %v2248_v3 = vpop.xlane.xlu1 %2247 }
0x1b15   :  { %v2251_v37 = vmul.f32 1.442695, %v2249_v2  ;;  %v2250_v4 = vsub.f32 %v2240_v58, %v2248_v3  ;;  %v3294_v3 = vld [vmem:[%s4332_s9 + $0x40] sm:$0xff]  }
0x1b17   :  { %3390 = vpow2.f32 %v2251_v37  ;;  %v2253_v5 = vmul.f32 1.442695, %v2250_v4  ;;  %v3295_v37 = vld [vmem:[%s4332_s9 + $0x48] sm:$0xff]   ;;  %v3296_v4 = vld [vmem:[%s4332_s9 + $0x50] sm:$0xff]  }
0x1b18   :  { %v2267_v6 = vpop.permute.xlu1 %2266 }
0x1b19   :  { %3392 = vpow2.f32 %v2253_v5  ;;  %3161 = vmatpush3.bf16.msra.mxu0 %v2267_v6  ;;  %v3298_v5 = vld [vmem:[%s4332_s9 + $0x60] sm:$0xff]   ;;  %v3299_v6 = vld [vmem:[%s4332_s9 + $0x68] sm:$0xff]  }
0x1b21   :  { %v3391_v43 = vpop.eup %3390 }
0x1b22   :  { %v2255_v8 = vsel %vm520_vm9, %v3391_v43, 0.0 }
0x1b23   :  { %v3393_v11 = vpop.eup %3392  ;;  %2256 = vadd.xlane.f32.xlu0 %v2255_v8  ;;  %v3301_v8 = vld [vmem:[%s4332_s9 + $0x78] sm:$0xff]  }
0x1b24   :  { %v2258_v12 = vsel %vm520_vm9, %v3393_v11, 0.0 }
0x1b27   :  { %2259 = vadd.xlane.f32.xlu0 %v2258_v12 }
0x1b51   :  { %v2183_v15 = vpop.f32.mrb[48].mxu0 }
0x1b52   :  { %v2190_v16 = vadd.f32 %v2183_v15, %v4181_v9  ;;  %v3152_v27 = vpop.f32.mrb[49].mxu0 }
0x1b53   :  { %v2186_v30 = vpop.f32.mrb[50].mxu0 }
0x1b54   :  { %v2191_v7 = vadd.f32 %v2186_v30, %v4183_v13  ;;  %v3153_v20 = vpop.f32.mrb[51].mxu0 }
0x1bb0   :  { %v2257_v21 = vpop.xlane.xlu0 %2256 }
0x1bb1   :  { %3394 = vrcp.f32 %v2257_v21 }
0x1bb4   :  { %v2260_v23 = vpop.xlane.xlu0 %2259 }
0x1bb5   :  { %3396 = vrcp.f32 %v2260_v23 }
0x1bbb   :  { %v3395_v10 = vpop.eup %3394 }
0x1bbc   :  { %v2263_v1 = vmul.f32 %v3395_v10, %v3391_v43  ;;  %v3300_v43 = vld [vmem:[%s4332_s9 + $0x70] sm:$0xff]  }
0x1bbf   :  { %v3397_v53 = vpop.eup %3396 }
0x1bc0   :  { %v2264_v24 = vmul.f32 %v3397_v53, %v3393_v11 }
0x1bc2   :  { %v2265_v17 = vpack.c.bf16 %v2264_v24, %v2263_v1 }
0x1bc4   :  { %3163 = vmatmul.mubr.msk.bf16.vlgmr.msra.gmra.mrb[52].mxu0 %vm520_vm9, %v2265_v17 }
0x1bc5   :  { %2478 = vmatprep.mubr.bf16.mxu0 %v3517_v0 }
0x1c97   :  { %v2306_v25 = vpop.f32.mrb[52].mxu0 }
0x1c98   :  { %v3164_v9 = vpop.f32.mrb[53].mxu0 }
0x1c99   :  { %v2309_v26 = vpop.f32.mrb[54].mxu0 }
0x1c9a   :  { %v2313_v28 = vpack.c.bf16 %v2309_v26, %v2306_v25  ;;  %v3165_v31 = vpop.f32.mrb[55].mxu0 }
0x1c9c   :  { %3169 = vmatmul.mubr.msk.bf16.vlgmr.msra.gmra.mrb[56].mxu1 %vm520_vm9, %v2313_v28 }
0x1c9d   :  { %3188 = vmatprep.mubr.msk.bf16.mxu1 %vm3524_vm8, %v3523_v42  ;;  %3173 = vmatpush3.bf16.msra.mxu1 %v3294_v3 }
0x1c9e   :  { %3174 = vmatprep.subr.bf16.mxu1 %v3523_v42 }
0x1ca1   :  { %3175 = vmatpush3.bf16.msra.mxu1 %v3295_v37 }
0x1ca2   :  { %3176 = vmatprep.subr.bf16.mxu1 %v3523_v42 }
0x1ca5   :  { %3177 = vmatpush3.bf16.msra.mxu1 %v3296_v4 }
0x1ca6   :  { %3178 = vmatprep.subr.bf16.mxu1 %v3523_v42 }
0x1d6f   :  { %v2359_v13 = vpop.f32.mrb[56].mxu1 }
0x1d70   :  { %v2366_v32 = vadd.f32 %v2359_v13, %v2190_v16  ;;  %v3170_v33 = vpop.f32.mrb[57].mxu1 }
0x1d71   :  { %v2362_v22 = vpop.f32.mrb[58].mxu1 }
0x1d72   :  { %v4235_v34 = vadd.f32 %v2366_v32, %v4035_v14  ;;  %v2367_v18 = vadd.f32 %v2362_v22, %v2191_v7  ;;  %v3171_v35 = vpop.f32.mrb[59].mxu1  ;;  %v3284_v14 = vld [vmem:[%s4331_s8 + $0x44] ss:$8 sps:$4 sm:$0xff]  }
0x1d73   :  { %2446 = vmatprep.subr.bf16.mxu0 %v3284_v14  ;;  %v3304_v35 = vld [vmem:[#allocation7 + $0x4] ss:$8 sps:$4 sm:$0xff]   ;;  %v3311_v14 = vld [vmem:[#allocation7 + $0x30] ss:$8 sps:$4 sm:$0xff]  }
0x1d74   :  { %v4238_v38 = vadd.f32 %v2367_v18, %v4038_v19  ;;  %v2371_v41 = vmul.f32 %v4235_v34, %v4235_v34  ;;  %v3282_v19 = vld [vmem:[%s4331_s8 + $0x40] ss:$8 sps:$4 sm:$0xff]  }
0x1d75   :  { %2447 = vmatpush1.bf16.msra.mxu0 %v3282_v19 }
0x1d76   :  { %v2373_v29 = vsel %vm287_vm6, %v2371_v41, 0.0  ;;  %v2372_v44 = vmul.f32 %v4238_v38, %v4238_v38  ;;  %2448 = vmatprep.subr.bf16.mxu0 %v3287_v39  ;;  %v3302_v41 = vld [vmem:[#allocation7] ss:$8 sps:$4 sm:$0xff]  }
0x1d77   :  { %2374 = vadd.xlane.f32.xlu0 %v2373_v29  ;;  %v3307_v29 = vld [vmem:[#allocation7 + $0x14] ss:$8 sps:$4 sm:$0xff]  }
0x1d78   :  { %v2376_v45 = vsel %vm287_vm6, %v2372_v44, 0.0  ;;  %v3305_v44 = vld [vmem:[#allocation7 + $0x10] ss:$8 sps:$4 sm:$0xff]  }
0x1d79   :  { %2449 = vmatpush1.bf16.msra.mxu0 %v3285_v36 }
0x1d7a   :  { %2450 = vmatprep.subr.bf16.mxu0 %v3290_v40 }
0x1d7b   :  { %2377 = vadd.xlane.f32.xlu0 %v2376_v45  ;;  %v3308_v45 = vld [vmem:[#allocation7 + $0x20] ss:$8 sps:$4 sm:$0xff]  }
0x1d7d   :  { %2451 = vmatpush1.bf16.msra.mxu0 %v3288_v61 }
0x1d7e   :  { %2452 = vmatprep.subr.bf16.mxu0 %v3293_v47 }
0x1d81   :  { %2453 = vmatpush1.bf16.msra.mxu0 %v3291_v46 }
0x1d82   :  { %2689 = vmatprep.subr.bf16.mxu0 %v3304_v35 }
0x1e04   :  { %v2375_v48 = vpop.xlane.xlu0 %2374 }
0x1e05   :  { %v2379_v49 = vmul.f32 0.015625, %v2375_v48 }
0x1e07   :  { %v2381_v50 = vadd.f32 1e-05, %v2379_v49 }
0x1e08   :  { %v2378_v51 = vpop.xlane.xlu0 %2377 }
0x1e09   :  { %3398 = vrsqrt.f32 %v2381_v50  ;;  %v2380_v52 = vmul.f32 0.015625, %v2378_v51  ;;  %v2910_v50 = vld [vmem:[#allocation5 + $0x4] ss:$0 sm:$0xff] }
0x1e0b   :  { %v2382_v54 = vadd.f32 1e-05, %v2380_v52 }
0x1e0d   :  { %3400 = vrsqrt.f32 %v2382_v54 }
0x1e13   :  { %v3399_v55 = vpop.eup %3398 }
0x1e14   :  { %v2385_v57 = vmul.f32 %v3399_v55, %v4235_v34 }
0x1e16   :  { %v2391_v62 = vmul.f32 %v2866_v59, %v2385_v57 }
0x1e17   :  { %v3401_v58 = vpop.eup %3400 }
0x1e18   :  { %v2386_v60 = vmul.f32 %v3401_v58, %v4238_v38 }
0x1e1a   :  { %v2392_v63 = vmul.f32 %v2866_v59, %v2386_v60 }
0x1e1c   :  { %v2393_v2 = vpack.c.bf16 %v2392_v63, %v2391_v62 }
0x1e1e   :  { %2883 = vmatmul.mubr.msk.bf16.vlgmr.msra.gmra.mrb[56].mxu0 %vm287_vm6, %v2393_v2 }
0x1e1f   :  { %2721 = vmatprep.mubr.bf16.mxu0 %v3517_v0  ;;  %v3297_v0 = vld [vmem:[%s4332_s9 + $0x58] sm:$0xff]   ;;  %2690 = vmatpush1.bf16.msra.mxu0 %v3302_v41  ;;  %s3531_s9 = smov [#allocation8]  }
0x1e20   :  { %3179 = vmatpush3.bf16.msra.mxu1 %v3297_v0  ;;  %2691 = vmatprep.subr.bf16.mxu0 %v3307_v29  ;;  %s2741_s29 = sshll.u32 %s3531_s9, 4  ;;  %s2742_s29 = int_to_ptr.vmem [resolvable:$true] %s2741_s29 }
0x1e21   :  { %3180 = vmatprep.subr.bf16.mxu1 %v3523_v42  ;;  %s3484_s0 = scalar_lea.vmem %s2742_s29, 512  ;;  %p3489_p11 = scmp.lt.s32.totalorder %s2742_s29, %s2742_s29 }
0x1e22   :  { %p3485_p10 = scmp.ne.s32.totalorder %s2742_s29, %s3484_s0  ;;  %p3490_p12 = scmp.lt.s32.totalorder %s3484_s0, %s3484_s0 }
0x1e23   :  { %2692 = vmatpush1.bf16.msra.mxu0 %v3305_v44 }
0x1e24   :  { %3181 = vmatpush3.bf16.msra.mxu1 %v3298_v5  ;;  %p3491_p13 = por %p3490_p12, %p3489_p11 }
0x1e25   :  { %3182 = vmatprep.subr.bf16.mxu1 %v3523_v42 }
0x1e26   :  { %p3492_p0 = pnand %p3491_p13, %p3485_p10 }
0x1e28   :  { %3183 = vmatpush3.bf16.msra.mxu1 %v3299_v6 }
0x1e29   :  { %3184 = vmatprep.subr.bf16.mxu1 %v3523_v42 }
0x1e2c   :  { %3185 = vmatpush3.bf16.msra.mxu1 %v3300_v43 }
0x1e2d   :  { %3186 = vmatprep.subr.bf16.mxu1 %v3523_v42 }
0x1e30   :  { %3187 = vmatpush3.bf16.msra.mxu1 %v3301_v8 }
0x1ef1   :  { %v2480_v11 = vpop.f32.mrb[56].mxu0 }
0x1ef2   :  { %v2884_v12 = vmul.f32 -1.442695, %v2480_v11  ;;  %v2482_v56 = vpop.f32.mrb[57].mxu0 }
0x1ef3   :  { %v2484_v15 = vpop.f32.mrb[58].mxu0 }
0x1ef4   :  { %3402 = vpow2.f32 %v2884_v12  ;;  %v2885_v16 = vmul.f32 -1.442695, %v2484_v15  ;;  %v2486_v27 = vpop.f32.mrb[59].mxu0 }
0x1ef6   :  { %3404 = vpow2.f32 %v2885_v16 }
0x1efe   :  { %v3403_v30 = vpop.eup %3402 }
0x1eff   :  { %v2495_v7 = vadd.f32 1.0, %v3403_v30 }
0x1f00   :  { %v3405_v20 = vpop.eup %3404 }
0x1f01   :  { %3406 = vrcp.f32 %v2495_v7  ;;  %v2496_v21 = vadd.f32 1.0, %v3405_v20 }
0x1f03   :  { %3408 = vrcp.f32 %v2496_v21 }
0x1f0b   :  { %v3407_v42 = vpop.eup %3406 }
0x1f0c   :  { %v2501_v23 = vmul.f32 %v3407_v42, %v2480_v11 }
0x1f0d   :  { %v3409_v10 = vpop.eup %3408 }
0x1f0e   :  { %v2503_v53 = vmul.f32 %v2501_v23, %v2482_v56  ;;  %v2502_v1 = vmul.f32 %v3409_v10, %v2484_v15 }
0x1f10   :  { %v2504_v24 = vmul.f32 %v2502_v1, %v2486_v27 }
0x1f12   :  { %v2505_v17 = vpack.c.bf16 %v2504_v24, %v2503_v53 }
0x1f14   :  { %3189 = vmatmul.mubr.bf16.vlgmr.msra.gmra.mrb[60].mxu1 %v2505_v17 }
0x1fe7   :  { %v2605_v25 = vpop.f32.mrb[60].mxu1 }
0x1fe8   :  { %v2612_v9 = vadd.f32 %v2605_v25, %v4235_v34  ;;  %v3190_v26 = vpop.f32.mrb[61].mxu1  ;;  %v3310_v34 = vld [vmem:[#allocation7 + $0x24] ss:$8 sps:$4 sm:$0xff]  }
0x1fe9   :  { %v2608_v28 = vpop.f32.mrb[62].mxu1  ;;  %2693 = vmatprep.subr.bf16.mxu0 %v3310_v34 }
0x1fea   :  { %v2615_v31 = vmul.f32 %v2612_v9, %v2612_v9  ;;  %v2613_v13 = vadd.f32 %v2608_v28, %v4238_v38  ;;  %v3191_v32 = vpop.f32.mrb[63].mxu1  ;;  %2694 = vmatpush1.bf16.msra.mxu0 %v3308_v45  ;;  %v3313_v38 = vld [vmem:[#allocation7 + $0x34] ss:$8 sps:$4 sm:$0xff]  }
0x1feb   :  { %2695 = vmatprep.subr.bf16.mxu0 %v3313_v38 }
0x1fec   :  { %v2616_v33 = vmul.f32 %v2613_v13, %v2613_v13  ;;  %v2617_v22 = vsel %vm287_vm6, %v2615_v31, 0.0 }
0x1fed   :  { %2618 = vadd.xlane.f32.xlu0 %v2617_v22 }
0x1fee   :  { %v2620_v18 = vsel %vm287_vm6, %v2616_v33, 0.0  ;;  %2696 = vmatpush1.bf16.msra.mxu0 %v3311_v14 }
0x1ff1   :  { %2621 = vadd.xlane.f32.xlu0 %v2620_v18 }
0x207a   :  { %v2619_v19 = vpop.xlane.xlu0 %2618 }
0x207b   :  { %v2623_v39 = vmul.f32 0.015625, %v2619_v19 }
0x207d   :  { %v2625_v36 = vadd.f32 1e-05, %v2623_v39 }
0x207e   :  { %v2622_v40 = vpop.xlane.xlu0 %2621 }
0x207f   :  { %3410 = vrsqrt.f32 %v2625_v36  ;;  %v2624_v61 = vmul.f32 0.015625, %v2622_v40 }
0x2081   :  { %v2626_v46 = vadd.f32 1e-05, %v2624_v61 }
0x2083   :  { %3412 = vrsqrt.f32 %v2626_v46 }
0x2089   :  { %v3411_v47 = vpop.eup %3410 }
0x208a   :  { %v2629_v48 = vmul.f32 %v3411_v47, %v2612_v9 }
0x208c   :  { %v2635_v54 = vmul.f32 %v2910_v50, %v2629_v48 }
0x208d   :  { %v3413_v49 = vpop.eup %3412 }
0x208e   :  { %v2630_v51 = vmul.f32 %v3413_v49, %v2613_v13 }
0x2090   :  { %v2636_v52 = vmul.f32 %v2910_v50, %v2630_v51 }
0x2092   :  { %v2637_v55 = vpack.c.bf16 %v2636_v52, %v2635_v54 }
0x2094   :  { %2919 = vmatmul.mubr.msk.bf16.vlgmr.msra.gmra.mrb[60].mxu0 %vm287_vm6, %v2637_v55 }
0x2167   :  { %v2723_v57 = vpop.f32.mrb[60].mxu0 }
0x2168   :  { %2732 = vst [vmem:[#allocation8] sm:$0xff] %v2723_v57  ;;  %v2725_v58 = vpop.f32.mrb[61].mxu0 }
0x2169   :  { %2733 = vst [vmem:[#allocation8 + $0x8] sm:$0xff] %v2725_v58  ;;  %v2727_v59 = vpop.f32.mrb[62].mxu0 }
0x216a   :  { %2734 = vst [vmem:[#allocation8 + $0x10] sm:$0xff] %v2727_v59  ;;  %v2729_v60 = vpop.f32.mrb[63].mxu0 }
0x216b   :  { %2735 = vst [vmem:[#allocation8 + $0x18] sm:$0xff] %v2729_v60 }
0x216c   :  { %3495 = shalt.err (!%p3492_p0)
}
0x216d   :  { %s3496_s5 = scalar_lea.hbm %s4335_s12, 512 }
0x216e   :  { %p3497_p1 = scmp.ne.s32.totalorder %s4335_s12, %s3496_s5  ;;  %p3500_p2 = scmp.lt.u32.totalorder %s3496_s5, %s4335_s12 }
0x2170   :  { %p3502_p3 = pnand %p3500_p2, %p3497_p1 }
0x2172   :  { %3505 = shalt.err (!%p3502_p3)
}
0x2173   :  { %s3532_s23 = smov 256  }
0x2174   :  { %2747 = dma.vmem_to_hbm [thread:$0]  %s2742_s29, 512, %s4335_s12, [#allocation4], %s3532_s23, %s3532_s23, %s3529_s13  }
0x2175   :  { %3510 = dma.done.wait [#allocation4], 512  }
0x2176   :  { %3511 = vsyncadd [#allocation4], 4294966784 }
0x2177   :  { %2751 = vsyncpa [#allocation3], 1 }
0x2178   :  { %2752 = vsyncpa [#allocation6], 1 }
0x2179   :  { %2753 = vsyncpa [#allocation4], 1 }

</bundles_post_ra>
